<compile_context>
chip_gen: v5e
topology: v5e:2x2
jax: 0.10.0
libtpu: 0.0.40
codegen_flags: <defaults>
</compile_context>

<pallas_src>
import jax
import jax.numpy as jnp
from jax.experimental import pallas as pl
from jax.experimental.pallas import tpu as pltpu

IMAGE_SIZE = 128  # H = W; pad sizes below are fixed by the module definition

CAM_VIEWS = ("Dashboard", "Right_side_window", "Rear_view")
PAD_UP    = {"Dashboard": 60, "Right_side_window": 20, "Rear_view": 60}
PAD_LEFT  = {"Dashboard": 60, "Right_side_window": 40, "Rear_view": 60}
PAD_DOWN  = {"Dashboard": 30, "Right_side_window": 0,  "Rear_view": 30}
PAD_RIGHT = {"Dashboard": 30, "Right_side_window": 30, "Rear_view": 30}


def init_params(key, image_size=IMAGE_SIZE):
    """Deterministic stand-in for torch.randn parameter init."""
    params = {}
    for view in CAM_VIEWS:
        k_up, k_down, k_left, k_right, key = jax.random.split(key, 5)
        ph = image_size - PAD_UP[view] - PAD_DOWN[view]
        params[view] = {
            "pad_up":    jax.random.normal(k_up,    (3, 1, PAD_UP[view],   image_size), jnp.float32),
            "pad_down":  jax.random.normal(k_down,  (3, 1, PAD_DOWN[view], image_size), jnp.float32),
            "pad_left":  jax.random.normal(k_left,  (3, 1, ph, PAD_LEFT[view]),  jnp.float32),
            "pad_right": jax.random.normal(k_right, (3, 1, ph, PAD_RIGHT[view]), jnp.float32),
        }
    return params


def build_prompts(params, image_size=IMAGE_SIZE):
    """Glue: assemble the per-view prompt image [V, 3, H, W] by concatenation
    (identical to the torch.cat construction in forward)."""
    prompts = []
    for view in CAM_VIEWS:
        p = params[view]
        ph = image_size - PAD_UP[view] - PAD_DOWN[view]
        pw = image_size - PAD_LEFT[view] - PAD_RIGHT[view]
        base = jnp.zeros((3, 1, ph, pw), jnp.float32)
        mid = jnp.concatenate([p["pad_left"], base, p["pad_right"]], axis=3)
        full = jnp.concatenate([p["pad_up"], mid, p["pad_down"]], axis=2)
        prompts.append(full[:, 0])  # [3, H, W]
    return jnp.stack(prompts, axis=0)  # [V, 3, H, W]


def _add_prompt_kernel(cam_ids_ref, x_ref, prompt_ref, o_ref):
    # x_ref / o_ref see a [C, t_blk, H, W] tile (B squeezed, t_blk frames).
    # prompt_ref sees the full VMEM-resident [V, C, H, W] prompt bank.
    b = pl.program_id(0)
    cam = cam_ids_ref[b]                       # scalar read from SMEM
    prompt = prompt_ref[cam]                   # [C, H, W] for this clip's view
    o_ref[...] = x_ref[...] + prompt[:, None, :, :]   # broadcast over frames


def _pick_t_block(T, frame_bytes, budget_bytes=8 << 20):
    """Largest divisor of T whose block stays under ~8 MiB (fits comfortably in
    scoped VMEM with double-buffered in/out on v5e/v6e/v7x)."""
    max_frames = max(1, budget_bytes // frame_bytes)
    t_blk = 1
    for d in range(1, T + 1):
        if T % d == 0 and d <= max_frames:
            t_blk = d
    return t_blk


def multicam_noise_crop_prompter(x, cam_ids, prompts):
    """x: [B, C, T, H, W] f32, cam_ids: [B] int32, prompts: [V, C, H, W] f32.
    Returns [x + prompts[cam_ids][:, :, None]] (a 1-element list, matching torch)."""
    B, C, T, H, W = x.shape
    V = prompts.shape[0]
    elem_bytes = jnp.dtype(x.dtype).itemsize
    t_blk = _pick_t_block(T, C * H * W * elem_bytes)

    cost = pl.CostEstimate(
        flops=int(x.size),
        transcendentals=0,
        bytes_accessed=int(2 * x.size * elem_bytes
                           + prompts.size * jnp.dtype(prompts.dtype).itemsize),
    )

    out = pl.pallas_call(
        _add_prompt_kernel,
        out_shape=jax.ShapeDtypeStruct(x.shape, x.dtype),
        grid_spec=pltpu.PrefetchScalarGridSpec(
            num_scalar_prefetch=1,
            grid=(B, T // t_blk),
            in_specs=[
                # t_blk frames of one clip: [C, t_blk, H, W]
                pl.BlockSpec((None, C, t_blk, H, W),
                             lambda b, t, cam: (b, 0, t, 0, 0)),
                # full prompt bank, constant index -> DMA'd once, VMEM-resident
                pl.BlockSpec((V, C, H, W),
                             lambda b, t, cam: (0, 0, 0, 0)),
            ],
            out_specs=pl.BlockSpec((None, C, t_blk, H, W),
                                   lambda b, t, cam: (b, 0, t, 0, 0)),
        ),
        compiler_params=pltpu.CompilerParams(
            dimension_semantics=("parallel", "parallel"),
            vmem_limit_bytes=48 << 20,
        ),
        # inputs are (cam_ids, x, prompts): alias x (index 1) to the output.
        input_output_aliases={1: 0},
        cost_estimate=cost,
    )(cam_ids, x, prompts)
    return [out]


if __name__ == "__main__":
    key = jax.random.PRNGKey(0)
    k_params, k_x = jax.random.split(key)

    B, C, T, H, W = 2, 3, 8, IMAGE_SIZE, IMAGE_SIZE
    cam_views = ["Dashboard", "Right_side_window"]  # one per clip
    cam_ids = jnp.array([CAM_VIEWS.index(v) for v in cam_views], dtype=jnp.int32)

    params = init_params(k_params)
    prompts = build_prompts(params)                       # [3, 3, H, W]
    x = jax.random.normal(k_x, (B, C, T, H, W), jnp.float32)

    # reference (plain-JAX semantics of the torch forward), computed BEFORE the
    # kernel call since x is aliased to the kernel output.
    ref = jax.block_until_ready(x + prompts[cam_ids][:, :, None, :, :])

    out = multicam_noise_crop_prompter(x, cam_ids, prompts)[0]
    out = jax.block_until_ready(out)

    assert out.shape == (B, C, T, H, W) and out.dtype == jnp.float32
    assert jnp.allclose(out, ref, atol=1e-6), "mismatch vs reference"

    print("KERNEL_OK")
</pallas_src>

<mosaic_0001>
module attributes {stable_mosaic.version = 11 : i64} {
  func.func @_add_prompt_kernel(%arg0: i32, %arg1: i32, %arg2: memref<2xi32, #tpu.memory_space<smem>>, %arg3: memref<1x3x8x128x128xf32, #tpu.memory_space<vmem>>, %arg4: memref<3x3x128x128xf32, #tpu.memory_space<vmem>>, %arg5: memref<1x3x8x128x128xf32, #tpu.memory_space<vmem>>) attributes {dimension_semantics = [#tpu.dimension_semantics<parallel>, #tpu.dimension_semantics<parallel>], iteration_bounds = array<i64: 2, 1>, scalar_prefetch = 1 : i64, scratch_operands = 0 : i64, tpu.core_type = #tpu.core_type<tc>, window_params = [{transform_indices = @transform_0, window_bounds = array<i64: 1, 3, 8, 128, 128>}, {pipeline_mode = #tpu.pipeline_mode<synchronous>, transform_indices = @transform_1, window_bounds = array<i64: 3, 3, 128, 128>}, {transform_indices = @transform_2, window_bounds = array<i64: 1, 3, 8, 128, 128>}]} {
    %0 = arith.index_cast %arg0 : i32 to index
    %1 = memref.load %arg2[%0] : memref<2xi32, #tpu.memory_space<smem>>
    %2 = arith.index_cast %1 : i32 to index
    %c0 = arith.constant 0 : index
    %c0_0 = arith.constant 0 : index
    %c0_1 = arith.constant 0 : index
    %3 = vector.load %arg4[%2, %c0, %c0_0, %c0_1] : memref<3x3x128x128xf32, #tpu.memory_space<vmem>>, vector<1x3x128x128xf32>
    %4 = vector.shape_cast %3 : vector<1x3x128x128xf32> to vector<3x128x128xf32>
    %c0_2 = arith.constant 0 : index
    %c0_3 = arith.constant 0 : index
    %c0_4 = arith.constant 0 : index
    %c0_5 = arith.constant 0 : index
    %c0_6 = arith.constant 0 : index
    %5 = vector.load %arg3[%c0_2, %c0_3, %c0_4, %c0_5, %c0_6] : memref<1x3x8x128x128xf32, #tpu.memory_space<vmem>>, vector<1x3x8x128x128xf32>
    %6 = vector.shape_cast %5 : vector<1x3x8x128x128xf32> to vector<3x8x128x128xf32>
    %7 = vector.shape_cast %4 : vector<3x128x128xf32> to vector<3x1x128x128xf32>
    %8 = vector.broadcast %7 : vector<3x1x128x128xf32> to vector<3x8x128x128xf32>
    %9 = arith.addf %6, %8 : vector<3x8x128x128xf32>
    %c0_7 = arith.constant 0 : index
    %c0_8 = arith.constant 0 : index
    %c0_9 = arith.constant 0 : index
    %c0_10 = arith.constant 0 : index
    %c0_11 = arith.constant 0 : index
    %10 = vector.load %arg5[%c0_7, %c0_8, %c0_9, %c0_10, %c0_11] : memref<1x3x8x128x128xf32, #tpu.memory_space<vmem>>, vector<1x3x8x128x128xf32>
    %11 = vector.shape_cast %10 : vector<1x3x8x128x128xf32> to vector<3x8x128x128xf32>
    %12 = vector.shape_cast %9 : vector<3x8x128x128xf32> to vector<1x3x8x128x128xf32>
    tpu.vector_store %arg5[%c0_7, %c0_8, %c0_9, %c0_10, %c0_11], %12 {strides = array<i32>} : memref<1x3x8x128x128xf32, #tpu.memory_space<vmem>>, vector<1x3x8x128x128xf32>,
    return
  }
  func.func @transform_0(%arg0: i32, %arg1: i32, %arg2: memref<2xi32, #tpu.memory_space<smem>>) -> (i32, i32, i32, i32, i32) {
    %c0_i32 = arith.constant 0 : i32
    %c0_i32_0 = arith.constant 0 : i32
    %c0_i32_1 = arith.constant 0 : i32
    %c0_i32_2 = arith.constant 0 : i32
    return %arg0, %c0_i32, %arg1, %c0_i32_0, %c0_i32_1 : i32, i32, i32, i32, i32
  }
  func.func @transform_1(%arg0: i32, %arg1: i32, %arg2: memref<2xi32, #tpu.memory_space<smem>>) -> (i32, i32, i32, i32) {
    %c0_i32 = arith.constant 0 : i32
    %c0_i32_0 = arith.constant 0 : i32
    %c0_i32_1 = arith.constant 0 : i32
    %c0_i32_2 = arith.constant 0 : i32
    %c0_i32_3 = arith.constant 0 : i32
    return %c0_i32, %c0_i32_0, %c0_i32_1, %c0_i32_2 : i32, i32, i32, i32
  }
  func.func @transform_2(%arg0: i32, %arg1: i32, %arg2: memref<2xi32, #tpu.memory_space<smem>>) -> (i32, i32, i32, i32, i32) {
    %c0_i32 = arith.constant 0 : i32
    %c0_i32_0 = arith.constant 0 : i32
    %c0_i32_1 = arith.constant 0 : i32
    %c0_i32_2 = arith.constant 0 : i32
    return %arg0, %c0_i32, %arg1, %c0_i32_0, %c0_i32_1 : i32, i32, i32, i32, i32
  }
}

</mosaic_0001>

<bundles_post_ra>
// kernel: tpu_custom_call.1
= control target key start
LH: loop header
LB: loop body
LE: loop exit
PB: predicated region body
PF: predicated region fallthrough
CT: control target
= control target key end

     0   :  { %s1713_s15 = smov [#allocation3]   ;;  %s3168_s0 = inlined_call_operand.vmem [shape: s32[2], index: 0, kind: input, shape index: {}]   ;;  %s3169_s1 = inlined_call_operand.hbm [shape: f32[2,3,8,128,128], index: 1, kind: input, shape index: {}, may-alias: {1,3}]   ;;  %s3170_s2 = inlined_call_operand.vmem [shape: f32[3,3,128,128], index: 2, kind: input, shape index: {}]   ;;  %s3171_s3 = inlined_call_operand.hbm [shape: f32[2,3,8,128,128], index: 3, kind: output, shape index: {}, may-alias: {1,3}]  }
   0x1   :  { %s9_s14 = sshll.u32 %s3168_s0, 4  ;;  %s10_s14 = int_to_ptr.vmem [resolvable:$true] %s9_s14 }
   0x2   :  { %12 = dma.vmem_to_smem %s10_s14, 16, %s1713_s15, [#allocation2] }
   0x3   :  { %1679 = dma.done.wait [#allocation2], 16 }
   0x4   :  { %1680 = vsyncadd [#allocation2], 4294967280 }
   0x5   :  { %15 = sfence }
   0x6   :  { %16 = vsyncpa [#allocation5], 0 }
   0x7   :  { %18 = vsyncpa [#allocation5 + $0x1], 0 }
   0x8   :  { %19 = vsyncpa [#allocation6], 0 }
   0x9   :  { %21 = vsyncpa [#allocation6 + $0x1], 0  ;;  %s1741_s16 = smov 0   ;;  %s1743_s17 = smov 0  }
   0xa   :  { %s1745_s18 = smov 0   ;;  %s1747_s19 = smov 0  }
   0xb   :  { %s1749_s20 = smov 0   ;;  %s1751_s0 = smov 0  }
   0xc LB: > { %s1505_s21 = sadd.s32 4294967295, %s1711_s0   ;;  %s1506_s22 = sadd.s32 4294967294, %s1711_s0   ;;  %s1711_s0 = sphi %s1751_s0, %s27_s0   ;;  %s1707_s20 = sphi %s1749_s20, %s3180_s20   ;;  %s1703_s19 = sphi %s1747_s19, %s3179_s19   ;;  %s1699_s18 = sphi %s1745_s18, %s3178_s18   ;;  %s1695_s17 = sphi %s1743_s17, %s3177_s17   ;;  %s1691_s16 = sphi %s1741_s16, %s3176_s16  }
   0xd   : > { %s39_s23 = sadd.s32 1, %s1707_s20  ;;  %s48_s24 = sadd.s32 1, %s1699_s18 }
   0xe   : > { %p41_p0 = scmp.ge.s32.totalorder %s39_s23, 2  ;;  %p55_p1 = scmp.ne.s32.totalorder %s1699_s18, %s1695_s17 }
   0xf   : > { %p56_p2 = scmp.eq.s32.totalorder %s1711_s0, 0  ;;  %p61_p3 = scmp.ne.s32.totalorder %s1695_s17, %s1691_s16 }
  0x10   : > { %s3182_s23 = smov (%p41_p0, %s39_s23), 0  ;;  %p62_p5 = scmp.eq.s32.totalorder %s1505_s21, 0 }
  0x11   : > { %p1782_p4 = por %p56_p2, %p55_p1  ;;  %s43_s26 = ssub.s32 %s1707_s20, %s3182_s23 }
  0x12   : > { %p108_p6 = scmp.eq.s32.totalorder %s1505_s21, 1  ;;  %p46_p7 = scmp.eq.s32.totalorder %s43_s26, 0 }
  0x13   : > { %p1788_p8 = por %p62_p5, %p61_p3  ;;  %p114_p10 = scmp.eq.s32.totalorder %s1506_s22, 1 }
  0x14   : > { %p1792_p9 = por %p108_p6, %p55_p1  ;;  %p1508_p12 = scmp.ge.s32.totalorder %s1711_s0, 2 }
  0x15   : > { %s1797_s29 = scalar_select %p46_p7, %s1699_s18, %s48_s24  }
  0x16   : > { %p1799_p11 = por %p114_p10, %p61_p3  ;;  %p1530_p13 = scmp.lt.s32.totalorder %s1711_s0, 2 }
  0x17   : > { %s137_s4 = sand.u32 1, %s1699_s18   ;;  %s1515_s6 = smul.u32 3072, %s1707_s20 }
  0x18   : > { %s1514_s5 = smul.u32 3072, %s137_s4  ;;  %p1523_p0 = pnand %p1530_p13, %p1782_p4 }
  0x19   : > { %s149_s9 = scalar_lea.hbm %s3169_s1, %s1515_s6  ;;  %p1510_p1 = scmp.ge.s32.totalorder %s1711_s0, 1 }
  0x1a   : > { %s141_s10 = scalar_lea.vmem [#allocation4], %s1514_s5  ;;  %s150_s12 = sshll.u32 %s149_s9, 4  ;;  %s151_s12 = int_to_ptr.hbm [resolvable:$true] %s150_s12 }
  0x1b   : > { %s152_s11 = sshll.u32 %s141_s10, 4  ;;  %s138_s13 = scalar_lea.sflag [#allocation5], %s137_s4  ;;  %s153_s11 = int_to_ptr.vmem [resolvable:$true] %s152_s11 }
  0x1c   : > { %s1714_s14 = smov 128   ;;  %s1715_s15 = smov 8  }
  0x1d   : > { %1525 = dma.hbm_to_vmem [thread:$0]  (!%p1523_p0), %s151_s12, 49152, %s153_s11, %s138_s13, %s1714_s14, %s1714_s14, %s1715_s15  }
  0x1e   : > { %p160_p2 = scmp.lt.s32.totalorder %s1711_s0, 3 }
  0x20   : > { %p161_p3 = pnand %p1510_p1, %p160_p2 }
  0x21   : > { %s1815_s21 = sand.u32 (!%p161_p3), 1, %s1695_s17  }
  0x22   : > { %164 = sbr.rel (%p161_p3) target bundleno = 439 (0x1b7), region = 28  ;;  %s167_s24 = scalar_lea.sflag (!%p161_p3), [#allocation5], %s1815_s21 }
  0x23   : > { %s1516_s22 = smul.u32 (!%p161_p3), 3072, %s1815_s21 }
  0x25   : > { %s1819_s25 = scalar_lea.vmem (!%p161_p3), [#allocation4], %s1516_s22 }
  0x27   : > { %1682 = dma.done.wait (%p1788_p8), %s167_s24, 49152  }
  0x28   : > { %1684 = vsyncadd (%p1788_p8), %s167_s24, 4294918144  ;;  %s194_s26 = sld [smem:[#allocation3 + %s1703_s19]]  ;;  %v245_v0 = vld [vmem:[%s1819_s25] sm:$0xff]  ;;  %v246_v1 = vld [vmem:[%s1819_s25 + $0x8] sm:$0xff]  ;;  %s1863_s27 = scalar_lea.vmem [#allocation7], %s1516_s22 }
  0x29   : > { %v247_v2 = vld [vmem:[%s1819_s25 + $0x10] sm:$0xff]  ;;  %v248_v3 = vld [vmem:[%s1819_s25 + $0x18] sm:$0xff]  ;;  %v249_v4 = vld [vmem:[%s1819_s25 + $0x20] sm:$0xff]  ;;  %s1517_s8 = smul.u32 3072, %s1703_s19  ;;  %s1413_s11 = sshll.u32 %s1863_s27, 4  ;;  %s1414_s11 = int_to_ptr.vmem [resolvable:$true] %s1413_s11 }
  0x2a   : > { %v250_v5 = vld [vmem:[%s1819_s25 + $0x28] sm:$0xff]  ;;  %v251_v17 = vld [vmem:[%s1819_s25 + $0x30] sm:$0xff]  ;;  %v252_v20 = vld [vmem:[%s1819_s25 + $0x38] sm:$0xff]  ;;  %s1398_s13 = scalar_lea.sflag [#allocation6], %s1815_s21 }
  0x2b   : > { %v253_v23 = vld [vmem:[%s1819_s25 + $0x40] sm:$0xff]  ;;  %v254_v26 = vld [vmem:[%s1819_s25 + $0x48] sm:$0xff]  ;;  %v255_v29 = vld [vmem:[%s1819_s25 + $0x50] sm:$0xff]  ;;  %s1412_s10 = scalar_lea.hbm %s3171_s3, %s1517_s8 }
  0x2c   : > { %v256_v32 = vld [vmem:[%s1819_s25 + $0x58] sm:$0xff]  ;;  %v257_v35 = vld [vmem:[%s1819_s25 + $0x60] sm:$0xff]  ;;  %v258_v38 = vld [vmem:[%s1819_s25 + $0x68] sm:$0xff]  ;;  %s1415_s12 = sshll.u32 %s1412_s10, 4  ;;  %s1416_s12 = int_to_ptr.hbm [resolvable:$true] %s1415_s12 }
  0x2d   : > { %v259_v41 = vld [vmem:[%s1819_s25 + $0x70] sm:$0xff]  ;;  %v260_v44 = vld [vmem:[%s1819_s25 + $0x78] sm:$0xff]  ;;  %v261_v46 = vld [vmem:[%s1819_s25 + $0x80] sm:$0xff]  ;;  %s1641_s14 = sshra.s32 %s1416_s12, 4  ;;  %s1642_s14 = int_to_ptr.hbm [resolvable:$true] %s1641_s14 }
  0x2e   : > { %s195_s4 = smul.u32 384, %s194_s26  ;;  %v262_v48 = vld [vmem:[%s1819_s25 + $0x88] sm:$0xff]  ;;  %v263_v50 = vld [vmem:[%s1819_s25 + $0x90] sm:$0xff]  ;;  %v264_v52 = vld [vmem:[%s1819_s25 + $0x98] sm:$0xff]  ;;  %s1643_s15 = scalar_lea.hbm %s1642_s14, 3072 }
  0x2f   : > { %v265_v54 = vld [vmem:[%s1819_s25 + $0xa0] sm:$0xff]  ;;  %v266_v56 = vld [vmem:[%s1819_s25 + $0xa8] sm:$0xff]  ;;  %v267_v58 = vld [vmem:[%s1819_s25 + $0xb0] sm:$0xff]  ;;  %p1644_p4 = scmp.ne.s32.totalorder %s1642_s14, %s1643_s15  ;;  %p1648_p7 = scmp.lt.s32.totalorder %s1642_s14, %s3171_s3 }
  0x30   : > { %s1832_s7 = scalar_lea.vmem %s3170_s2, %s195_s4  ;;  %v268_v60 = vld [vmem:[%s1819_s25 + $0xb8] sm:$0xff]  ;;  %v269_v62 = vld [vmem:[%s1819_s25 + $0xc0] sm:$0xff] }
  0x31   : > { %v1838_v6 = vld [vmem:[%s1832_s7] sm:$0xff]  ;;  %v1841_v7 = vld [vmem:[%s1832_s7 + $0x8] sm:$0xff]  ;;  %v1844_v8 = vld [vmem:[%s1832_s7 + $0x10] sm:$0xff]  ;;  %p1645_p5 = pnand %p1644_p4, %p1792_p9 }
  0x32   : > { %v629_v9 = vadd.f32 %v245_v0, %v1838_v6  ;;  %v630_v10 = vadd.f32 %v246_v1, %v1841_v7  ;;  %v631_v11 = vadd.f32 %v247_v2, %v1844_v8  ;;  %v1850_v12 = vld [vmem:[%s1832_s7 + $0x18] sm:$0xff]  ;;  %v1853_v13 = vld [vmem:[%s1832_s7 + $0x20] sm:$0xff]  ;;  %v1856_v14 = vld [vmem:[%s1832_s7 + $0x28] sm:$0xff]  ;;  %v645_v51 = vadd.f32 %v261_v46, %v1838_v6 }
  0x33   : > { %v632_v15 = vadd.f32 %v248_v3, %v1850_v12  ;;  %v1860_v16 = vld [vmem:[%s1832_s7 + $0x30] sm:$0xff]  ;;  %v633_v18 = vadd.f32 %v249_v4, %v1853_v13  ;;  %v1868_v19 = vld [vmem:[%s1832_s7 + $0x38] sm:$0xff]  ;;  %v634_v21 = vadd.f32 %v250_v5, %v1856_v14  ;;  %v1874_v22 = vld [vmem:[%s1832_s7 + $0x40] sm:$0xff]  ;;  %v646_v53 = vadd.f32 %v262_v48, %v1841_v7  ;;  %p1646_p6 = pneg %p1645_p5 }
  0x34   : > { %1013 = vst [vmem:[%s1863_s27] sm:$0xff] %v629_v9  ;;  %v635_v24 = vadd.f32 %v251_v17, %v1860_v16  ;;  %v1880_v25 = vld [vmem:[%s1832_s7 + $0x48] sm:$0xff]  ;;  %v636_v27 = vadd.f32 %v252_v20, %v1868_v19  ;;  %v1886_v28 = vld [vmem:[%s1832_s7 + $0x50] sm:$0xff]  ;;  %v637_v30 = vadd.f32 %v253_v23, %v1874_v22  ;;  %v1892_v31 = vld [vmem:[%s1832_s7 + $0x58] sm:$0xff]  ;;  %v647_v55 = vadd.f32 %v263_v50, %v1844_v8 }
  0x35   : > { %1014 = vst [vmem:[%s1863_s27 + $0x8] sm:$0xff] %v630_v10  ;;  %v638_v33 = vadd.f32 %v254_v26, %v1880_v25  ;;  %v1898_v34 = vld [vmem:[%s1832_s7 + $0x60] sm:$0xff]  ;;  %v639_v36 = vadd.f32 %v255_v29, %v1886_v28  ;;  %v1904_v37 = vld [vmem:[%s1832_s7 + $0x68] sm:$0xff]  ;;  %v640_v39 = vadd.f32 %v256_v32, %v1892_v31  ;;  %v1910_v40 = vld [vmem:[%s1832_s7 + $0x70] sm:$0xff]  ;;  %v648_v57 = vadd.f32 %v264_v52, %v1850_v12 }
  0x36   : > { %1015 = vst [vmem:[%s1863_s27 + $0x10] sm:$0xff] %v631_v11  ;;  %v641_v42 = vadd.f32 %v257_v35, %v1898_v34  ;;  %v1916_v43 = vld [vmem:[%s1832_s7 + $0x78] sm:$0xff]  ;;  %v642_v45 = vadd.f32 %v258_v38, %v1904_v37  ;;  %v643_v47 = vadd.f32 %v259_v41, %v1910_v40  ;;  %v649_v59 = vadd.f32 %v265_v54, %v1853_v13  ;;  %v270_v0 = vld [vmem:[%s1819_s25 + $0xc8] sm:$0xff]  ;;  %v271_v2 = vld [vmem:[%s1819_s25 + $0xd0] sm:$0xff] }
  0x37   : > { %1016 = vst [vmem:[%s1863_s27 + $0x18] sm:$0xff] %v632_v15  ;;  %v644_v49 = vadd.f32 %v260_v44, %v1916_v43  ;;  %v650_v61 = vadd.f32 %v266_v56, %v1856_v14  ;;  %v651_v63 = vadd.f32 %v267_v58, %v1860_v16  ;;  %v652_v1 = vadd.f32 %v268_v60, %v1868_v19  ;;  %v272_v4 = vld [vmem:[%s1819_s25 + $0xd8] sm:$0xff]  ;;  %v273_v9 = vld [vmem:[%s1819_s25 + $0xe0] sm:$0xff]  ;;  %v274_v11 = vld [vmem:[%s1819_s25 + $0xe8] sm:$0xff] }
  0x38   : > { %1017 = vst [vmem:[%s1863_s27 + $0x20] sm:$0xff] %v633_v18  ;;  %v653_v3 = vadd.f32 %v269_v62, %v1874_v22  ;;  %v654_v5 = vadd.f32 %v270_v0, %v1880_v25  ;;  %v655_v10 = vadd.f32 %v271_v2, %v1886_v28  ;;  %v656_v15 = vadd.f32 %v272_v4, %v1892_v31  ;;  %v275_v17 = vld [vmem:[%s1819_s25 + $0xf0] sm:$0xff]  ;;  %v276_v20 = vld [vmem:[%s1819_s25 + $0xf8] sm:$0xff]  ;;  %v277_v23 = vld [vmem:[%s1819_s25 + $0x100] sm:$0xff] }
  0x39   : > { %1018 = vst [vmem:[%s1863_s27 + $0x28] sm:$0xff] %v634_v21  ;;  %v657_v18 = vadd.f32 %v273_v9, %v1898_v34  ;;  %v658_v21 = vadd.f32 %v274_v11, %v1904_v37  ;;  %v278_v26 = vld [vmem:[%s1819_s25 + $0x108] sm:$0xff]  ;;  %v279_v29 = vld [vmem:[%s1819_s25 + $0x110] sm:$0xff]  ;;  %v280_v32 = vld [vmem:[%s1819_s25 + $0x118] sm:$0xff] }
  0x3a   : > { %1019 = vst [vmem:[%s1863_s27 + $0x30] sm:$0xff] %v635_v24  ;;  %v659_v24 = vadd.f32 %v275_v17, %v1910_v40  ;;  %v281_v35 = vld [vmem:[%s1819_s25 + $0x120] sm:$0xff]  ;;  %v282_v38 = vld [vmem:[%s1819_s25 + $0x128] sm:$0xff]  ;;  %v283_v41 = vld [vmem:[%s1819_s25 + $0x130] sm:$0xff] }
  0x3b   : > { %1020 = vst [vmem:[%s1863_s27 + $0x38] sm:$0xff] %v636_v27  ;;  %v660_v27 = vadd.f32 %v276_v20, %v1916_v43  ;;  %v284_v44 = vld [vmem:[%s1819_s25 + $0x138] sm:$0xff]  ;;  %v285_v46 = vld [vmem:[%s1819_s25 + $0x140] sm:$0xff]  ;;  %v286_v48 = vld [vmem:[%s1819_s25 + $0x148] sm:$0xff] }
  0x3c   : > { %1021 = vst [vmem:[%s1863_s27 + $0x40] sm:$0xff] %v637_v30  ;;  %v661_v30 = vadd.f32 %v277_v23, %v1838_v6  ;;  %v287_v50 = vld [vmem:[%s1819_s25 + $0x150] sm:$0xff]  ;;  %v288_v52 = vld [vmem:[%s1819_s25 + $0x158] sm:$0xff]  ;;  %v289_v54 = vld [vmem:[%s1819_s25 + $0x160] sm:$0xff] }
  0x3d   : > { %1022 = vst [vmem:[%s1863_s27 + $0x48] sm:$0xff] %v638_v33  ;;  %v662_v33 = vadd.f32 %v278_v26, %v1841_v7  ;;  %v290_v56 = vld [vmem:[%s1819_s25 + $0x168] sm:$0xff]  ;;  %v291_v58 = vld [vmem:[%s1819_s25 + $0x170] sm:$0xff]  ;;  %v292_v60 = vld [vmem:[%s1819_s25 + $0x178] sm:$0xff] }
  0x3e   : > { %1023 = vst [vmem:[%s1863_s27 + $0x50] sm:$0xff] %v639_v36  ;;  %v663_v36 = vadd.f32 %v279_v29, %v1844_v8  ;;  %v293_v62 = vld [vmem:[%s1819_s25 + $0x180] sm:$0xff]  ;;  %v294_v0 = vld [vmem:[%s1819_s25 + $0x188] sm:$0xff]  ;;  %v295_v2 = vld [vmem:[%s1819_s25 + $0x190] sm:$0xff] }
  0x3f   : > { %1024 = vst [vmem:[%s1863_s27 + $0x58] sm:$0xff] %v640_v39  ;;  %v664_v39 = vadd.f32 %v280_v32, %v1850_v12  ;;  %v296_v4 = vld [vmem:[%s1819_s25 + $0x198] sm:$0xff]  ;;  %v297_v9 = vld [vmem:[%s1819_s25 + $0x1a0] sm:$0xff]  ;;  %v298_v11 = vld [vmem:[%s1819_s25 + $0x1a8] sm:$0xff] }
  0x40   : > { %1025 = vst [vmem:[%s1863_s27 + $0x60] sm:$0xff] %v641_v42  ;;  %v665_v42 = vadd.f32 %v281_v35, %v1853_v13  ;;  %v299_v17 = vld [vmem:[%s1819_s25 + $0x1b0] sm:$0xff]  ;;  %v300_v20 = vld [vmem:[%s1819_s25 + $0x1b8] sm:$0xff]  ;;  %v301_v23 = vld [vmem:[%s1819_s25 + $0x1c0] sm:$0xff] }
  0x41   : > { %1026 = vst [vmem:[%s1863_s27 + $0x68] sm:$0xff] %v642_v45  ;;  %v666_v45 = vadd.f32 %v282_v38, %v1856_v14  ;;  %v302_v26 = vld [vmem:[%s1819_s25 + $0x1c8] sm:$0xff]  ;;  %v303_v29 = vld [vmem:[%s1819_s25 + $0x1d0] sm:$0xff]  ;;  %v304_v32 = vld [vmem:[%s1819_s25 + $0x1d8] sm:$0xff] }
  0x42   : > { %1027 = vst [vmem:[%s1863_s27 + $0x70] sm:$0xff] %v643_v47  ;;  %v667_v47 = vadd.f32 %v283_v41, %v1860_v16  ;;  %v305_v35 = vld [vmem:[%s1819_s25 + $0x1e0] sm:$0xff]  ;;  %v306_v38 = vld [vmem:[%s1819_s25 + $0x1e8] sm:$0xff]  ;;  %v307_v41 = vld [vmem:[%s1819_s25 + $0x1f0] sm:$0xff] }
  0x43   : > { %1028 = vst [vmem:[%s1863_s27 + $0x78] sm:$0xff] %v644_v49  ;;  %v668_v49 = vadd.f32 %v284_v44, %v1868_v19  ;;  %v308_v44 = vld [vmem:[%s1819_s25 + $0x1f8] sm:$0xff] }
  0x44   : > { %1029 = vst [vmem:[%s1863_s27 + $0x80] sm:$0xff] %v645_v51  ;;  %v669_v51 = vadd.f32 %v285_v46, %v1874_v22  ;;  %v309_v46 = vld [vmem:[%s1819_s25 + $0x200] sm:$0xff] }
  0x45   : > { %1030 = vst [vmem:[%s1863_s27 + $0x88] sm:$0xff] %v646_v53  ;;  %v670_v53 = vadd.f32 %v286_v48, %v1880_v25  ;;  %v310_v48 = vld [vmem:[%s1819_s25 + $0x208] sm:$0xff] }
  0x46   : > { %1031 = vst [vmem:[%s1863_s27 + $0x90] sm:$0xff] %v647_v55  ;;  %v671_v55 = vadd.f32 %v287_v50, %v1886_v28  ;;  %v311_v50 = vld [vmem:[%s1819_s25 + $0x210] sm:$0xff] }
  0x47   : > { %1032 = vst [vmem:[%s1863_s27 + $0x98] sm:$0xff] %v648_v57  ;;  %v672_v57 = vadd.f32 %v288_v52, %v1892_v31  ;;  %v312_v52 = vld [vmem:[%s1819_s25 + $0x218] sm:$0xff] }
  0x48   : > { %1033 = vst [vmem:[%s1863_s27 + $0xa0] sm:$0xff] %v649_v59  ;;  %v673_v59 = vadd.f32 %v289_v54, %v1898_v34  ;;  %v313_v54 = vld [vmem:[%s1819_s25 + $0x220] sm:$0xff] }
  0x49   : > { %1034 = vst [vmem:[%s1863_s27 + $0xa8] sm:$0xff] %v650_v61  ;;  %v674_v61 = vadd.f32 %v290_v56, %v1904_v37  ;;  %v314_v56 = vld [vmem:[%s1819_s25 + $0x228] sm:$0xff] }
  0x4a   : > { %1035 = vst [vmem:[%s1863_s27 + $0xb0] sm:$0xff] %v651_v63  ;;  %v675_v63 = vadd.f32 %v291_v58, %v1910_v40  ;;  %v315_v58 = vld [vmem:[%s1819_s25 + $0x230] sm:$0xff] }
  0x4b   : > { %1036 = vst [vmem:[%s1863_s27 + $0xb8] sm:$0xff] %v652_v1  ;;  %v676_v1 = vadd.f32 %v292_v60, %v1916_v43  ;;  %v316_v60 = vld [vmem:[%s1819_s25 + $0x238] sm:$0xff] }
  0x4c   : > { %1037 = vst [vmem:[%s1863_s27 + $0xc0] sm:$0xff] %v653_v3  ;;  %v677_v3 = vadd.f32 %v293_v62, %v1838_v6  ;;  %v317_v62 = vld [vmem:[%s1819_s25 + $0x240] sm:$0xff] }
  0x4d   : > { %1038 = vst [vmem:[%s1863_s27 + $0xc8] sm:$0xff] %v654_v5  ;;  %v678_v5 = vadd.f32 %v294_v0, %v1841_v7  ;;  %v318_v0 = vld [vmem:[%s1819_s25 + $0x248] sm:$0xff] }
  0x4e   : > { %1039 = vst [vmem:[%s1863_s27 + $0xd0] sm:$0xff] %v655_v10  ;;  %v679_v10 = vadd.f32 %v295_v2, %v1844_v8  ;;  %v319_v2 = vld [vmem:[%s1819_s25 + $0x250] sm:$0xff] }
  0x4f   : > { %1040 = vst [vmem:[%s1863_s27 + $0xd8] sm:$0xff] %v656_v15  ;;  %v680_v15 = vadd.f32 %v296_v4, %v1850_v12  ;;  %v320_v4 = vld [vmem:[%s1819_s25 + $0x258] sm:$0xff] }
  0x50   : > { %1041 = vst [vmem:[%s1863_s27 + $0xe0] sm:$0xff] %v657_v18  ;;  %v681_v18 = vadd.f32 %v297_v9, %v1853_v13  ;;  %v321_v9 = vld [vmem:[%s1819_s25 + $0x260] sm:$0xff] }
  0x51   : > { %1042 = vst [vmem:[%s1863_s27 + $0xe8] sm:$0xff] %v658_v21  ;;  %v682_v21 = vadd.f32 %v298_v11, %v1856_v14  ;;  %v322_v11 = vld [vmem:[%s1819_s25 + $0x268] sm:$0xff] }
  0x52   : > { %1043 = vst [vmem:[%s1863_s27 + $0xf0] sm:$0xff] %v659_v24  ;;  %v683_v24 = vadd.f32 %v299_v17, %v1860_v16  ;;  %v323_v17 = vld [vmem:[%s1819_s25 + $0x270] sm:$0xff] }
  0x53   : > { %1044 = vst [vmem:[%s1863_s27 + $0xf8] sm:$0xff] %v660_v27  ;;  %v684_v27 = vadd.f32 %v300_v20, %v1868_v19  ;;  %v324_v20 = vld [vmem:[%s1819_s25 + $0x278] sm:$0xff] }
  0x54   : > { %1045 = vst [vmem:[%s1863_s27 + $0x100] sm:$0xff] %v661_v30  ;;  %v685_v30 = vadd.f32 %v301_v23, %v1874_v22  ;;  %v325_v23 = vld [vmem:[%s1819_s25 + $0x280] sm:$0xff] }
  0x55   : > { %1046 = vst [vmem:[%s1863_s27 + $0x108] sm:$0xff] %v662_v33  ;;  %v686_v33 = vadd.f32 %v302_v26, %v1880_v25  ;;  %v326_v26 = vld [vmem:[%s1819_s25 + $0x288] sm:$0xff] }
  0x56   : > { %1047 = vst [vmem:[%s1863_s27 + $0x110] sm:$0xff] %v663_v36  ;;  %v687_v36 = vadd.f32 %v303_v29, %v1886_v28  ;;  %v327_v29 = vld [vmem:[%s1819_s25 + $0x290] sm:$0xff] }
  0x57   : > { %1048 = vst [vmem:[%s1863_s27 + $0x118] sm:$0xff] %v664_v39  ;;  %v688_v39 = vadd.f32 %v304_v32, %v1892_v31  ;;  %v328_v32 = vld [vmem:[%s1819_s25 + $0x298] sm:$0xff] }
  0x58   : > { %1049 = vst [vmem:[%s1863_s27 + $0x120] sm:$0xff] %v665_v42  ;;  %v689_v42 = vadd.f32 %v305_v35, %v1898_v34  ;;  %v329_v35 = vld [vmem:[%s1819_s25 + $0x2a0] sm:$0xff] }
  0x59   : > { %1050 = vst [vmem:[%s1863_s27 + $0x128] sm:$0xff] %v666_v45  ;;  %v690_v45 = vadd.f32 %v306_v38, %v1904_v37  ;;  %v330_v38 = vld [vmem:[%s1819_s25 + $0x2a8] sm:$0xff] }
  0x5a   : > { %1051 = vst [vmem:[%s1863_s27 + $0x130] sm:$0xff] %v667_v47  ;;  %v691_v47 = vadd.f32 %v307_v41, %v1910_v40  ;;  %v331_v41 = vld [vmem:[%s1819_s25 + $0x2b0] sm:$0xff] }
  0x5b   : > { %1052 = vst [vmem:[%s1863_s27 + $0x138] sm:$0xff] %v668_v49  ;;  %v692_v49 = vadd.f32 %v308_v44, %v1916_v43  ;;  %v332_v44 = vld [vmem:[%s1819_s25 + $0x2b8] sm:$0xff] }
  0x5c   : > { %1053 = vst [vmem:[%s1863_s27 + $0x140] sm:$0xff] %v669_v51  ;;  %v693_v51 = vadd.f32 %v309_v46, %v1838_v6  ;;  %v333_v46 = vld [vmem:[%s1819_s25 + $0x2c0] sm:$0xff] }
  0x5d   : > { %1054 = vst [vmem:[%s1863_s27 + $0x148] sm:$0xff] %v670_v53  ;;  %v694_v53 = vadd.f32 %v310_v48, %v1841_v7  ;;  %v334_v48 = vld [vmem:[%s1819_s25 + $0x2c8] sm:$0xff] }
  0x5e   : > { %1055 = vst [vmem:[%s1863_s27 + $0x150] sm:$0xff] %v671_v55  ;;  %v695_v55 = vadd.f32 %v311_v50, %v1844_v8  ;;  %v335_v50 = vld [vmem:[%s1819_s25 + $0x2d0] sm:$0xff] }
  0x5f   : > { %1056 = vst [vmem:[%s1863_s27 + $0x158] sm:$0xff] %v672_v57  ;;  %v696_v57 = vadd.f32 %v312_v52, %v1850_v12  ;;  %v336_v52 = vld [vmem:[%s1819_s25 + $0x2d8] sm:$0xff] }
  0x60   : > { %1057 = vst [vmem:[%s1863_s27 + $0x160] sm:$0xff] %v673_v59  ;;  %v697_v59 = vadd.f32 %v313_v54, %v1853_v13  ;;  %v337_v54 = vld [vmem:[%s1819_s25 + $0x2e0] sm:$0xff] }
  0x61   : > { %1058 = vst [vmem:[%s1863_s27 + $0x168] sm:$0xff] %v674_v61  ;;  %v698_v61 = vadd.f32 %v314_v56, %v1856_v14  ;;  %v338_v56 = vld [vmem:[%s1819_s25 + $0x2e8] sm:$0xff] }
  0x62   : > { %1059 = vst [vmem:[%s1863_s27 + $0x170] sm:$0xff] %v675_v63  ;;  %v699_v63 = vadd.f32 %v315_v58, %v1860_v16  ;;  %v339_v58 = vld [vmem:[%s1819_s25 + $0x2f0] sm:$0xff] }
  0x63   : > { %1060 = vst [vmem:[%s1863_s27 + $0x178] sm:$0xff] %v676_v1  ;;  %v700_v1 = vadd.f32 %v316_v60, %v1868_v19  ;;  %v340_v60 = vld [vmem:[%s1819_s25 + $0x2f8] sm:$0xff] }
  0x64   : > { %1061 = vst [vmem:[%s1863_s27 + $0x180] sm:$0xff] %v677_v3  ;;  %v701_v3 = vadd.f32 %v317_v62, %v1874_v22  ;;  %v341_v62 = vld [vmem:[%s1819_s25 + $0x300] sm:$0xff] }
  0x65   : > { %1062 = vst [vmem:[%s1863_s27 + $0x188] sm:$0xff] %v678_v5  ;;  %v702_v5 = vadd.f32 %v318_v0, %v1880_v25  ;;  %v342_v0 = vld [vmem:[%s1819_s25 + $0x308] sm:$0xff] }
  0x66   : > { %1063 = vst [vmem:[%s1863_s27 + $0x190] sm:$0xff] %v679_v10  ;;  %v703_v10 = vadd.f32 %v319_v2, %v1886_v28  ;;  %v343_v2 = vld [vmem:[%s1819_s25 + $0x310] sm:$0xff] }
  0x67   : > { %1064 = vst [vmem:[%s1863_s27 + $0x198] sm:$0xff] %v680_v15  ;;  %v704_v15 = vadd.f32 %v320_v4, %v1892_v31  ;;  %v344_v4 = vld [vmem:[%s1819_s25 + $0x318] sm:$0xff] }
  0x68   : > { %1065 = vst [vmem:[%s1863_s27 + $0x1a0] sm:$0xff] %v681_v18  ;;  %v705_v18 = vadd.f32 %v321_v9, %v1898_v34  ;;  %v345_v9 = vld [vmem:[%s1819_s25 + $0x320] sm:$0xff] }
  0x69   : > { %1066 = vst [vmem:[%s1863_s27 + $0x1a8] sm:$0xff] %v682_v21  ;;  %v706_v21 = vadd.f32 %v322_v11, %v1904_v37  ;;  %v346_v11 = vld [vmem:[%s1819_s25 + $0x328] sm:$0xff] }
  0x6a   : > { %1067 = vst [vmem:[%s1863_s27 + $0x1b0] sm:$0xff] %v683_v24  ;;  %v707_v24 = vadd.f32 %v323_v17, %v1910_v40  ;;  %v347_v17 = vld [vmem:[%s1819_s25 + $0x330] sm:$0xff] }
  0x6b   : > { %1068 = vst [vmem:[%s1863_s27 + $0x1b8] sm:$0xff] %v684_v27  ;;  %v708_v27 = vadd.f32 %v324_v20, %v1916_v43  ;;  %v348_v20 = vld [vmem:[%s1819_s25 + $0x338] sm:$0xff] }
  0x6c   : > { %1069 = vst [vmem:[%s1863_s27 + $0x1c0] sm:$0xff] %v685_v30  ;;  %v709_v30 = vadd.f32 %v325_v23, %v1838_v6  ;;  %v349_v23 = vld [vmem:[%s1819_s25 + $0x340] sm:$0xff] }
  0x6d   : > { %1070 = vst [vmem:[%s1863_s27 + $0x1c8] sm:$0xff] %v686_v33  ;;  %v710_v33 = vadd.f32 %v326_v26, %v1841_v7  ;;  %v350_v26 = vld [vmem:[%s1819_s25 + $0x348] sm:$0xff] }
  0x6e   : > { %1071 = vst [vmem:[%s1863_s27 + $0x1d0] sm:$0xff] %v687_v36  ;;  %v711_v36 = vadd.f32 %v327_v29, %v1844_v8  ;;  %v351_v29 = vld [vmem:[%s1819_s25 + $0x350] sm:$0xff] }
  0x6f   : > { %1072 = vst [vmem:[%s1863_s27 + $0x1d8] sm:$0xff] %v688_v39  ;;  %v712_v39 = vadd.f32 %v328_v32, %v1850_v12  ;;  %v352_v32 = vld [vmem:[%s1819_s25 + $0x358] sm:$0xff] }
  0x70   : > { %1073 = vst [vmem:[%s1863_s27 + $0x1e0] sm:$0xff] %v689_v42  ;;  %v713_v42 = vadd.f32 %v329_v35, %v1853_v13  ;;  %v353_v35 = vld [vmem:[%s1819_s25 + $0x360] sm:$0xff] }
  0x71   : > { %1074 = vst [vmem:[%s1863_s27 + $0x1e8] sm:$0xff] %v690_v45  ;;  %v714_v45 = vadd.f32 %v330_v38, %v1856_v14  ;;  %v354_v38 = vld [vmem:[%s1819_s25 + $0x368] sm:$0xff] }
  0x72   : > { %1075 = vst [vmem:[%s1863_s27 + $0x1f0] sm:$0xff] %v691_v47  ;;  %v715_v47 = vadd.f32 %v331_v41, %v1860_v16  ;;  %v355_v41 = vld [vmem:[%s1819_s25 + $0x370] sm:$0xff] }
  0x73   : > { %1076 = vst [vmem:[%s1863_s27 + $0x1f8] sm:$0xff] %v692_v49  ;;  %v716_v49 = vadd.f32 %v332_v44, %v1868_v19  ;;  %v356_v44 = vld [vmem:[%s1819_s25 + $0x378] sm:$0xff] }
  0x74   : > { %1077 = vst [vmem:[%s1863_s27 + $0x200] sm:$0xff] %v693_v51  ;;  %v717_v51 = vadd.f32 %v333_v46, %v1874_v22  ;;  %v357_v46 = vld [vmem:[%s1819_s25 + $0x380] sm:$0xff] }
  0x75   : > { %1078 = vst [vmem:[%s1863_s27 + $0x208] sm:$0xff] %v694_v53  ;;  %v718_v53 = vadd.f32 %v334_v48, %v1880_v25  ;;  %v358_v48 = vld [vmem:[%s1819_s25 + $0x388] sm:$0xff] }
  0x76   : > { %1079 = vst [vmem:[%s1863_s27 + $0x210] sm:$0xff] %v695_v55  ;;  %v719_v55 = vadd.f32 %v335_v50, %v1886_v28  ;;  %v359_v50 = vld [vmem:[%s1819_s25 + $0x390] sm:$0xff] }
  0x77   : > { %1080 = vst [vmem:[%s1863_s27 + $0x218] sm:$0xff] %v696_v57  ;;  %v720_v57 = vadd.f32 %v336_v52, %v1892_v31  ;;  %v360_v52 = vld [vmem:[%s1819_s25 + $0x398] sm:$0xff] }
  0x78   : > { %1081 = vst [vmem:[%s1863_s27 + $0x220] sm:$0xff] %v697_v59  ;;  %v721_v59 = vadd.f32 %v337_v54, %v1898_v34  ;;  %v361_v54 = vld [vmem:[%s1819_s25 + $0x3a0] sm:$0xff] }
  0x79   : > { %1082 = vst [vmem:[%s1863_s27 + $0x228] sm:$0xff] %v698_v61  ;;  %v722_v61 = vadd.f32 %v338_v56, %v1904_v37  ;;  %v362_v56 = vld [vmem:[%s1819_s25 + $0x3a8] sm:$0xff] }
  0x7a   : > { %1083 = vst [vmem:[%s1863_s27 + $0x230] sm:$0xff] %v699_v63  ;;  %v723_v63 = vadd.f32 %v339_v58, %v1910_v40  ;;  %v745_v58 = vadd.f32 %v361_v54, %v1853_v13  ;;  %v386_v54 = vld [vmem:[%s1819_s25 + $0x468] sm:$0xff] }
  0x7b   : > { %1084 = vst [vmem:[%s1863_s27 + $0x238] sm:$0xff] %v700_v1  ;;  %v724_v1 = vadd.f32 %v340_v60, %v1916_v43 }
  0x7c   : > { %1085 = vst [vmem:[%s1863_s27 + $0x240] sm:$0xff] %v701_v3  ;;  %v725_v3 = vadd.f32 %v341_v62, %v1838_v6 }
  0x7d   : > { %1086 = vst [vmem:[%s1863_s27 + $0x248] sm:$0xff] %v702_v5  ;;  %v726_v5 = vadd.f32 %v342_v0, %v1841_v7 }
  0x7e   : > { %1087 = vst [vmem:[%s1863_s27 + $0x250] sm:$0xff] %v703_v10  ;;  %v727_v10 = vadd.f32 %v343_v2, %v1844_v8 }
  0x7f   : > { %1088 = vst [vmem:[%s1863_s27 + $0x258] sm:$0xff] %v704_v15  ;;  %v728_v15 = vadd.f32 %v344_v4, %v1850_v12  ;;  %v373_v4 = vld [vmem:[%s1819_s25 + $0x400] sm:$0xff] }
  0x80   : > { %1089 = vst [vmem:[%s1863_s27 + $0x260] sm:$0xff] %v705_v18  ;;  %v729_v18 = vadd.f32 %v345_v9, %v1853_v13  ;;  %v367_v13 = vld [vmem:[%s1819_s25 + $0x3d0] sm:$0xff] }
  0x81   : > { %1090 = vst [vmem:[%s1863_s27 + $0x268] sm:$0xff] %v706_v21  ;;  %v730_v21 = vadd.f32 %v346_v11, %v1856_v14  ;;  %v751_v0 = vadd.f32 %v367_v13, %v1886_v28  ;;  %v391_v13 = vld [vmem:[%s1819_s25 + $0x490] sm:$0xff] }
  0x82   : > { %1091 = vst [vmem:[%s1863_s27 + $0x270] sm:$0xff] %v707_v24  ;;  %v731_v24 = vadd.f32 %v347_v17, %v1860_v16 }
  0x83   : > { %1092 = vst [vmem:[%s1863_s27 + $0x278] sm:$0xff] %v708_v27  ;;  %v732_v27 = vadd.f32 %v348_v20, %v1868_v19 }
  0x84   : > { %1093 = vst [vmem:[%s1863_s27 + $0x280] sm:$0xff] %v709_v30  ;;  %v733_v30 = vadd.f32 %v349_v23, %v1874_v22  ;;  %v378_v23 = vld [vmem:[%s1819_s25 + $0x428] sm:$0xff] }
  0x85   : > { %1094 = vst [vmem:[%s1863_s27 + $0x288] sm:$0xff] %v710_v33  ;;  %v734_v33 = vadd.f32 %v350_v26, %v1880_v25  ;;  %v2294_v26 = vld [vmem:[%s1832_s7 + $0xb0] sm:$0xff] }
  0x86   : > { %1095 = vst [vmem:[%s1863_s27 + $0x290] sm:$0xff] %v711_v36  ;;  %v735_v36 = vadd.f32 %v351_v29, %v1886_v28  ;;  %v2258_v28 = vld [vmem:[%s1832_s7 + $0x80] sm:$0xff] }
  0x87   : > { %1096 = vst [vmem:[%s1863_s27 + $0x298] sm:$0xff] %v712_v39  ;;  %v736_v39 = vadd.f32 %v352_v32, %v1892_v31  ;;  %v757_v11 = vadd.f32 %v373_v4, %v2258_v28  ;;  %v380_v32 = vld [vmem:[%s1819_s25 + $0x438] sm:$0xff]  ;;  %v397_v4 = vld [vmem:[%s1819_s25 + $0x4c0] sm:$0xff] }
  0x88   : > { %1097 = vst [vmem:[%s1863_s27 + $0x2a0] sm:$0xff] %v713_v42  ;;  %v737_v42 = vadd.f32 %v353_v35, %v1898_v34  ;;  %v2306_v35 = vld [vmem:[%s1832_s7 + $0xc0] sm:$0xff] }
  0x89   : > { %1098 = vst [vmem:[%s1863_s27 + $0x2a8] sm:$0xff] %v714_v45  ;;  %v738_v45 = vadd.f32 %v354_v38, %v1904_v37 }
  0x8a   : > { %1099 = vst [vmem:[%s1863_s27 + $0x2b0] sm:$0xff] %v715_v47  ;;  %v739_v47 = vadd.f32 %v355_v41, %v1910_v40  ;;  %v382_v41 = vld [vmem:[%s1819_s25 + $0x448] sm:$0xff] }
  0x8b   : > { %1100 = vst [vmem:[%s1863_s27 + $0x2b8] sm:$0xff] %v716_v49  ;;  %v740_v49 = vadd.f32 %v356_v44, %v1916_v43  ;;  %v2318_v44 = vld [vmem:[%s1832_s7 + $0xd0] sm:$0xff] }
  0x8c   : > { %1101 = vst [vmem:[%s1863_s27 + $0x2c0] sm:$0xff] %v717_v51  ;;  %v741_v51 = vadd.f32 %v357_v46, %v1838_v6  ;;  %v363_v6 = vld [vmem:[%s1819_s25 + $0x3b0] sm:$0xff] }
  0x8d   : > { %1102 = vst [vmem:[%s1863_s27 + $0x2c8] sm:$0xff] %v718_v53  ;;  %v742_v53 = vadd.f32 %v358_v48, %v1841_v7  ;;  %v364_v7 = vld [vmem:[%s1819_s25 + $0x3b8] sm:$0xff]  ;;  %v747_v60 = vadd.f32 %v363_v6, %v1860_v16  ;;  %v369_v16 = vld [vmem:[%s1819_s25 + $0x3e0] sm:$0xff] }
  0x8e   : > { %1103 = vst [vmem:[%s1863_s27 + $0x2d0] sm:$0xff] %v719_v55  ;;  %v743_v55 = vadd.f32 %v359_v50, %v1844_v8  ;;  %v365_v8 = vld [vmem:[%s1819_s25 + $0x3c0] sm:$0xff]  ;;  %v753_v2 = vadd.f32 %v369_v16, %v1898_v34  ;;  %v374_v34 = vld [vmem:[%s1819_s25 + $0x408] sm:$0xff]  ;;  %v384_v48 = vld [vmem:[%s1819_s25 + $0x458] sm:$0xff] }
  0x8f   : > { %1104 = vst [vmem:[%s1863_s27 + $0x2d8] sm:$0xff] %v720_v57  ;;  %v744_v57 = vadd.f32 %v360_v52, %v1850_v12  ;;  %v366_v12 = vld [vmem:[%s1819_s25 + $0x3c8] sm:$0xff]  ;;  %v749_v62 = vadd.f32 %v365_v8, %v1874_v22  ;;  %v371_v22 = vld [vmem:[%s1819_s25 + $0x3f0] sm:$0xff]  ;;  %v2330_v50 = vld [vmem:[%s1832_s7 + $0xe0] sm:$0xff] }
  0x90   : > { %1105 = vst [vmem:[%s1863_s27 + $0x2e0] sm:$0xff] %v721_v59  ;;  %v746_v59 = vadd.f32 %v362_v56, %v1856_v14  ;;  %v368_v14 = vld [vmem:[%s1819_s25 + $0x3d8] sm:$0xff]  ;;  %v2342_v56 = vld [vmem:[%s1832_s7 + $0xf0] sm:$0xff]  ;;  %v389_v8 = vld [vmem:[%s1819_s25 + $0x480] sm:$0xff] }
  0x91   : > { %1106 = vst [vmem:[%s1863_s27 + $0x2e8] sm:$0xff] %v722_v61  ;;  %v748_v61 = vadd.f32 %v364_v7, %v1868_v19  ;;  %v370_v19 = vld [vmem:[%s1819_s25 + $0x3e8] sm:$0xff]  ;;  %v388_v7 = vld [vmem:[%s1819_s25 + $0x478] sm:$0xff]  ;;  %v393_v16 = vld [vmem:[%s1819_s25 + $0x4a0] sm:$0xff] }
  0x92   : > { %1107 = vst [vmem:[%s1863_s27 + $0x2f0] sm:$0xff] %v723_v63  ;;  %v750_v63 = vadd.f32 %v366_v12, %v1880_v25  ;;  %v372_v25 = vld [vmem:[%s1819_s25 + $0x3f8] sm:$0xff]  ;;  %v390_v12 = vld [vmem:[%s1819_s25 + $0x488] sm:$0xff] }
  0x93   : > { %1108 = vst [vmem:[%s1863_s27 + $0x2f8] sm:$0xff] %v724_v1  ;;  %v752_v1 = vadd.f32 %v368_v14, %v1892_v31  ;;  %v755_v31 = vadd.f32 %v371_v22, %v1910_v40  ;;  %v756_v9 = vadd.f32 %v372_v25, %v1916_v43  ;;  %v376_v40 = vld [vmem:[%s1819_s25 + $0x418] sm:$0xff]  ;;  %v377_v43 = vld [vmem:[%s1819_s25 + $0x420] sm:$0xff]  ;;  %v395_v22 = vld [vmem:[%s1819_s25 + $0x4b0] sm:$0xff] }
  0x94   : > { %1109 = vst [vmem:[%s1863_s27 + $0x300] sm:$0xff] %v725_v3  ;;  %v754_v3 = vadd.f32 %v370_v19, %v1904_v37  ;;  %v375_v37 = vld [vmem:[%s1819_s25 + $0x410] sm:$0xff]  ;;  %v392_v14 = vld [vmem:[%s1819_s25 + $0x498] sm:$0xff]  ;;  %v394_v19 = vld [vmem:[%s1819_s25 + $0x4a8] sm:$0xff] }
  0x95   : > { %1110 = vst [vmem:[%s1863_s27 + $0x308] sm:$0xff] %v726_v5  ;;  %v2264_v5 = vld [vmem:[%s1832_s7 + $0x88] sm:$0xff]  ;;  %v396_v25 = vld [vmem:[%s1819_s25 + $0x4b8] sm:$0xff] }
  0x96   : > { %1111 = vst [vmem:[%s1863_s27 + $0x310] sm:$0xff] %v727_v10  ;;  %v2270_v10 = vld [vmem:[%s1832_s7 + $0x90] sm:$0xff]  ;;  %v758_v17 = vadd.f32 %v374_v34, %v2264_v5  ;;  %v398_v34 = vld [vmem:[%s1819_s25 + $0x4c8] sm:$0xff] }
  0x97   : > { %1112 = vst [vmem:[%s1863_s27 + $0x318] sm:$0xff] %v728_v15  ;;  %v2276_v15 = vld [vmem:[%s1832_s7 + $0x98] sm:$0xff]  ;;  %v759_v20 = vadd.f32 %v375_v37, %v2270_v10  ;;  %v399_v37 = vld [vmem:[%s1819_s25 + $0x4d0] sm:$0xff] }
  0x98   : > { %1113 = vst [vmem:[%s1863_s27 + $0x320] sm:$0xff] %v729_v18  ;;  %v2282_v18 = vld [vmem:[%s1832_s7 + $0xa0] sm:$0xff] }
  0x99   : > { %1114 = vst [vmem:[%s1863_s27 + $0x328] sm:$0xff] %v730_v21  ;;  %v2288_v21 = vld [vmem:[%s1832_s7 + $0xa8] sm:$0xff]  ;;  %v761_v29 = vadd.f32 %v377_v43, %v2282_v18  ;;  %v401_v43 = vld [vmem:[%s1819_s25 + $0x4e0] sm:$0xff] }
  0x9a   : > { %1115 = vst [vmem:[%s1863_s27 + $0x330] sm:$0xff] %v731_v24  ;;  %v760_v24 = vadd.f32 %v376_v40, %v2276_v15  ;;  %v400_v40 = vld [vmem:[%s1819_s25 + $0x4d8] sm:$0xff] }
  0x9b   : > { %1116 = vst [vmem:[%s1863_s27 + $0x338] sm:$0xff] %v732_v27  ;;  %v379_v27 = vld [vmem:[%s1819_s25 + $0x430] sm:$0xff] }
  0x9c   : > { %1117 = vst [vmem:[%s1863_s27 + $0x340] sm:$0xff] %v733_v30  ;;  %v2300_v30 = vld [vmem:[%s1832_s7 + $0xb8] sm:$0xff]  ;;  %v763_v38 = vadd.f32 %v379_v27, %v2294_v26  ;;  %v403_v27 = vld [vmem:[%s1819_s25 + $0x4f0] sm:$0xff] }
  0x9d   : > { %1118 = vst [vmem:[%s1863_s27 + $0x348] sm:$0xff] %v734_v33  ;;  %v762_v33 = vadd.f32 %v378_v23, %v2288_v21  ;;  %v402_v23 = vld [vmem:[%s1819_s25 + $0x4e8] sm:$0xff] }
  0x9e   : > { %1119 = vst [vmem:[%s1863_s27 + $0x350] sm:$0xff] %v735_v36  ;;  %v381_v36 = vld [vmem:[%s1819_s25 + $0x440] sm:$0xff] }
  0x9f   : > { %1120 = vst [vmem:[%s1863_s27 + $0x358] sm:$0xff] %v736_v39  ;;  %v2312_v39 = vld [vmem:[%s1832_s7 + $0xc8] sm:$0xff]  ;;  %v765_v46 = vadd.f32 %v381_v36, %v2306_v35  ;;  %v405_v36 = vld [vmem:[%s1819_s25 + $0x500] sm:$0xff] }
  0xa0   : > { %1121 = vst [vmem:[%s1863_s27 + $0x360] sm:$0xff] %v737_v42  ;;  %v764_v42 = vadd.f32 %v380_v32, %v2300_v30  ;;  %v404_v32 = vld [vmem:[%s1819_s25 + $0x4f8] sm:$0xff] }
  0xa1   : > { %1122 = vst [vmem:[%s1863_s27 + $0x368] sm:$0xff] %v738_v45  ;;  %v383_v45 = vld [vmem:[%s1819_s25 + $0x450] sm:$0xff] }
  0xa2   : > { %1123 = vst [vmem:[%s1863_s27 + $0x370] sm:$0xff] %v739_v47  ;;  %v2324_v47 = vld [vmem:[%s1832_s7 + $0xd8] sm:$0xff]  ;;  %v767_v52 = vadd.f32 %v383_v45, %v2318_v44  ;;  %v407_v45 = vld [vmem:[%s1819_s25 + $0x510] sm:$0xff] }
  0xa3   : > { %1124 = vst [vmem:[%s1863_s27 + $0x378] sm:$0xff] %v740_v49  ;;  %v766_v49 = vadd.f32 %v382_v41, %v2312_v39  ;;  %v406_v41 = vld [vmem:[%s1819_s25 + $0x508] sm:$0xff] }
  0xa4   : > { %1125 = vst [vmem:[%s1863_s27 + $0x380] sm:$0xff] %v741_v51  ;;  %v385_v51 = vld [vmem:[%s1819_s25 + $0x460] sm:$0xff] }
  0xa5   : > { %1126 = vst [vmem:[%s1863_s27 + $0x388] sm:$0xff] %v742_v53  ;;  %v2336_v53 = vld [vmem:[%s1832_s7 + $0xe8] sm:$0xff]  ;;  %v769_v6 = vadd.f32 %v385_v51, %v2330_v50  ;;  %v409_v51 = vld [vmem:[%s1819_s25 + $0x520] sm:$0xff] }
  0xa6   : > { %1127 = vst [vmem:[%s1863_s27 + $0x390] sm:$0xff] %v743_v55  ;;  %v768_v55 = vadd.f32 %v384_v48, %v2324_v47  ;;  %v408_v48 = vld [vmem:[%s1819_s25 + $0x518] sm:$0xff] }
  0xa7   : > { %1128 = vst [vmem:[%s1863_s27 + $0x398] sm:$0xff] %v744_v57  ;;  %v387_v57 = vld [vmem:[%s1819_s25 + $0x470] sm:$0xff] }
  0xa8   : > { %1129 = vst [vmem:[%s1863_s27 + $0x3a0] sm:$0xff] %v745_v58  ;;  %v2348_v58 = vld [vmem:[%s1832_s7 + $0xf8] sm:$0xff] }
  0xa9   : > { %1130 = vst [vmem:[%s1863_s27 + $0x3a8] sm:$0xff] %v746_v59  ;;  %v770_v59 = vadd.f32 %v386_v54, %v2336_v53  ;;  %v410_v54 = vld [vmem:[%s1819_s25 + $0x528] sm:$0xff] }
  0xaa   : > { %1131 = vst [vmem:[%s1863_s27 + $0x3b0] sm:$0xff] %v747_v60  ;;  %v771_v60 = vadd.f32 %v387_v57, %v2342_v56  ;;  %v411_v57 = vld [vmem:[%s1819_s25 + $0x530] sm:$0xff] }
  0xab   : > { %1132 = vst [vmem:[%s1863_s27 + $0x3b8] sm:$0xff] %v748_v61  ;;  %v772_v61 = vadd.f32 %v388_v7, %v2348_v58  ;;  %v412_v7 = vld [vmem:[%s1819_s25 + $0x538] sm:$0xff] }
  0xac   : > { %1133 = vst [vmem:[%s1863_s27 + $0x3c0] sm:$0xff] %v749_v62  ;;  %v773_v62 = vadd.f32 %v389_v8, %v2258_v28  ;;  %v413_v8 = vld [vmem:[%s1819_s25 + $0x540] sm:$0xff] }
  0xad   : > { %1134 = vst [vmem:[%s1863_s27 + $0x3c8] sm:$0xff] %v750_v63  ;;  %v774_v63 = vadd.f32 %v390_v12, %v2264_v5  ;;  %v414_v12 = vld [vmem:[%s1819_s25 + $0x548] sm:$0xff] }
  0xae   : > { %1135 = vst [vmem:[%s1863_s27 + $0x3d0] sm:$0xff] %v751_v0  ;;  %v775_v0 = vadd.f32 %v391_v13, %v2270_v10  ;;  %v415_v13 = vld [vmem:[%s1819_s25 + $0x550] sm:$0xff] }
  0xaf   : > { %1136 = vst [vmem:[%s1863_s27 + $0x3d8] sm:$0xff] %v752_v1  ;;  %v776_v1 = vadd.f32 %v392_v14, %v2276_v15  ;;  %v416_v14 = vld [vmem:[%s1819_s25 + $0x558] sm:$0xff] }
  0xb0   : > { %1137 = vst [vmem:[%s1863_s27 + $0x3e0] sm:$0xff] %v753_v2  ;;  %v777_v2 = vadd.f32 %v393_v16, %v2282_v18  ;;  %v417_v16 = vld [vmem:[%s1819_s25 + $0x560] sm:$0xff] }
  0xb1   : > { %1138 = vst [vmem:[%s1863_s27 + $0x3e8] sm:$0xff] %v754_v3  ;;  %v778_v3 = vadd.f32 %v394_v19, %v2288_v21  ;;  %v418_v19 = vld [vmem:[%s1819_s25 + $0x568] sm:$0xff] }
  0xb2   : > { %1139 = vst [vmem:[%s1863_s27 + $0x3f0] sm:$0xff] %v755_v31  ;;  %v779_v31 = vadd.f32 %v395_v22, %v2294_v26  ;;  %v419_v22 = vld [vmem:[%s1819_s25 + $0x570] sm:$0xff] }
  0xb3   : > { %1140 = vst [vmem:[%s1863_s27 + $0x3f8] sm:$0xff] %v756_v9  ;;  %v780_v9 = vadd.f32 %v396_v25, %v2300_v30  ;;  %v420_v25 = vld [vmem:[%s1819_s25 + $0x578] sm:$0xff] }
  0xb4   : > { %1141 = vst [vmem:[%s1863_s27 + $0x400] sm:$0xff] %v757_v11  ;;  %v781_v11 = vadd.f32 %v397_v4, %v2306_v35  ;;  %v421_v4 = vld [vmem:[%s1819_s25 + $0x580] sm:$0xff] }
  0xb5   : > { %1142 = vst [vmem:[%s1863_s27 + $0x408] sm:$0xff] %v758_v17  ;;  %v782_v17 = vadd.f32 %v398_v34, %v2312_v39  ;;  %v422_v34 = vld [vmem:[%s1819_s25 + $0x588] sm:$0xff] }
  0xb6   : > { %1143 = vst [vmem:[%s1863_s27 + $0x410] sm:$0xff] %v759_v20  ;;  %v783_v20 = vadd.f32 %v399_v37, %v2318_v44  ;;  %v423_v37 = vld [vmem:[%s1819_s25 + $0x590] sm:$0xff] }
  0xb7   : > { %1144 = vst [vmem:[%s1863_s27 + $0x418] sm:$0xff] %v760_v24  ;;  %v784_v24 = vadd.f32 %v400_v40, %v2324_v47  ;;  %v424_v40 = vld [vmem:[%s1819_s25 + $0x598] sm:$0xff] }
  0xb8   : > { %1145 = vst [vmem:[%s1863_s27 + $0x420] sm:$0xff] %v761_v29  ;;  %v785_v29 = vadd.f32 %v401_v43, %v2330_v50  ;;  %v425_v43 = vld [vmem:[%s1819_s25 + $0x5a0] sm:$0xff] }
  0xb9   : > { %1146 = vst [vmem:[%s1863_s27 + $0x428] sm:$0xff] %v762_v33  ;;  %v786_v33 = vadd.f32 %v402_v23, %v2336_v53  ;;  %v426_v23 = vld [vmem:[%s1819_s25 + $0x5a8] sm:$0xff] }
  0xba   : > { %1147 = vst [vmem:[%s1863_s27 + $0x430] sm:$0xff] %v763_v38  ;;  %v787_v38 = vadd.f32 %v403_v27, %v2342_v56  ;;  %v427_v27 = vld [vmem:[%s1819_s25 + $0x5b0] sm:$0xff] }
  0xbb   : > { %1148 = vst [vmem:[%s1863_s27 + $0x438] sm:$0xff] %v764_v42  ;;  %v788_v42 = vadd.f32 %v404_v32, %v2348_v58  ;;  %v428_v32 = vld [vmem:[%s1819_s25 + $0x5b8] sm:$0xff] }
  0xbc   : > { %1149 = vst [vmem:[%s1863_s27 + $0x440] sm:$0xff] %v765_v46  ;;  %v789_v46 = vadd.f32 %v405_v36, %v2258_v28  ;;  %v429_v36 = vld [vmem:[%s1819_s25 + $0x5c0] sm:$0xff] }
  0xbd   : > { %1150 = vst [vmem:[%s1863_s27 + $0x448] sm:$0xff] %v766_v49  ;;  %v790_v49 = vadd.f32 %v406_v41, %v2264_v5  ;;  %v430_v41 = vld [vmem:[%s1819_s25 + $0x5c8] sm:$0xff] }
  0xbe   : > { %1151 = vst [vmem:[%s1863_s27 + $0x450] sm:$0xff] %v767_v52  ;;  %v791_v52 = vadd.f32 %v407_v45, %v2270_v10  ;;  %v431_v45 = vld [vmem:[%s1819_s25 + $0x5d0] sm:$0xff] }
  0xbf   : > { %1152 = vst [vmem:[%s1863_s27 + $0x458] sm:$0xff] %v768_v55  ;;  %v792_v55 = vadd.f32 %v408_v48, %v2276_v15  ;;  %v432_v48 = vld [vmem:[%s1819_s25 + $0x5d8] sm:$0xff] }
  0xc0   : > { %1153 = vst [vmem:[%s1863_s27 + $0x460] sm:$0xff] %v769_v6  ;;  %v793_v6 = vadd.f32 %v409_v51, %v2282_v18  ;;  %v433_v51 = vld [vmem:[%s1819_s25 + $0x5e0] sm:$0xff] }
  0xc1   : > { %1154 = vst [vmem:[%s1863_s27 + $0x468] sm:$0xff] %v770_v59  ;;  %v794_v59 = vadd.f32 %v410_v54, %v2288_v21  ;;  %v434_v54 = vld [vmem:[%s1819_s25 + $0x5e8] sm:$0xff] }
  0xc2   : > { %1155 = vst [vmem:[%s1863_s27 + $0x470] sm:$0xff] %v771_v60  ;;  %v795_v60 = vadd.f32 %v411_v57, %v2294_v26  ;;  %v435_v57 = vld [vmem:[%s1819_s25 + $0x5f0] sm:$0xff] }
  0xc3   : > { %1156 = vst [vmem:[%s1863_s27 + $0x478] sm:$0xff] %v772_v61  ;;  %v796_v61 = vadd.f32 %v412_v7, %v2300_v30  ;;  %v436_v7 = vld [vmem:[%s1819_s25 + $0x5f8] sm:$0xff] }
  0xc4   : > { %1157 = vst [vmem:[%s1863_s27 + $0x480] sm:$0xff] %v773_v62  ;;  %v797_v62 = vadd.f32 %v413_v8, %v2306_v35  ;;  %v437_v8 = vld [vmem:[%s1819_s25 + $0x600] sm:$0xff] }
  0xc5   : > { %1158 = vst [vmem:[%s1863_s27 + $0x488] sm:$0xff] %v774_v63  ;;  %v798_v63 = vadd.f32 %v414_v12, %v2312_v39  ;;  %v438_v12 = vld [vmem:[%s1819_s25 + $0x608] sm:$0xff] }
  0xc6   : > { %1159 = vst [vmem:[%s1863_s27 + $0x490] sm:$0xff] %v775_v0  ;;  %v799_v0 = vadd.f32 %v415_v13, %v2318_v44  ;;  %v439_v13 = vld [vmem:[%s1819_s25 + $0x610] sm:$0xff] }
  0xc7   : > { %1160 = vst [vmem:[%s1863_s27 + $0x498] sm:$0xff] %v776_v1  ;;  %v800_v1 = vadd.f32 %v416_v14, %v2324_v47  ;;  %v440_v14 = vld [vmem:[%s1819_s25 + $0x618] sm:$0xff] }
  0xc8   : > { %1161 = vst [vmem:[%s1863_s27 + $0x4a0] sm:$0xff] %v777_v2  ;;  %v801_v2 = vadd.f32 %v417_v16, %v2330_v50  ;;  %v441_v16 = vld [vmem:[%s1819_s25 + $0x620] sm:$0xff] }
  0xc9   : > { %1162 = vst [vmem:[%s1863_s27 + $0x4a8] sm:$0xff] %v778_v3  ;;  %v802_v3 = vadd.f32 %v418_v19, %v2336_v53  ;;  %v442_v19 = vld [vmem:[%s1819_s25 + $0x628] sm:$0xff] }
  0xca   : > { %1163 = vst [vmem:[%s1863_s27 + $0x4b0] sm:$0xff] %v779_v31  ;;  %v803_v31 = vadd.f32 %v419_v22, %v2342_v56  ;;  %v443_v22 = vld [vmem:[%s1819_s25 + $0x630] sm:$0xff] }
  0xcb   : > { %1164 = vst [vmem:[%s1863_s27 + $0x4b8] sm:$0xff] %v780_v9  ;;  %v804_v9 = vadd.f32 %v420_v25, %v2348_v58  ;;  %v444_v25 = vld [vmem:[%s1819_s25 + $0x638] sm:$0xff] }
  0xcc   : > { %1165 = vst [vmem:[%s1863_s27 + $0x4c0] sm:$0xff] %v781_v11  ;;  %v805_v11 = vadd.f32 %v421_v4, %v2258_v28  ;;  %v445_v4 = vld [vmem:[%s1819_s25 + $0x640] sm:$0xff] }
  0xcd   : > { %1166 = vst [vmem:[%s1863_s27 + $0x4c8] sm:$0xff] %v782_v17  ;;  %v806_v17 = vadd.f32 %v422_v34, %v2264_v5  ;;  %v446_v34 = vld [vmem:[%s1819_s25 + $0x648] sm:$0xff] }
  0xce   : > { %1167 = vst [vmem:[%s1863_s27 + $0x4d0] sm:$0xff] %v783_v20  ;;  %v807_v20 = vadd.f32 %v423_v37, %v2270_v10  ;;  %v447_v37 = vld [vmem:[%s1819_s25 + $0x650] sm:$0xff] }
  0xcf   : > { %1168 = vst [vmem:[%s1863_s27 + $0x4d8] sm:$0xff] %v784_v24  ;;  %v808_v24 = vadd.f32 %v424_v40, %v2276_v15  ;;  %v448_v40 = vld [vmem:[%s1819_s25 + $0x658] sm:$0xff] }
  0xd0   : > { %1169 = vst [vmem:[%s1863_s27 + $0x4e0] sm:$0xff] %v785_v29  ;;  %v809_v29 = vadd.f32 %v425_v43, %v2282_v18  ;;  %v449_v43 = vld [vmem:[%s1819_s25 + $0x660] sm:$0xff] }
  0xd1   : > { %1170 = vst [vmem:[%s1863_s27 + $0x4e8] sm:$0xff] %v786_v33  ;;  %v810_v33 = vadd.f32 %v426_v23, %v2288_v21  ;;  %v450_v23 = vld [vmem:[%s1819_s25 + $0x668] sm:$0xff] }
  0xd2   : > { %1171 = vst [vmem:[%s1863_s27 + $0x4f0] sm:$0xff] %v787_v38  ;;  %v811_v38 = vadd.f32 %v427_v27, %v2294_v26  ;;  %v451_v27 = vld [vmem:[%s1819_s25 + $0x670] sm:$0xff] }
  0xd3   : > { %1172 = vst [vmem:[%s1863_s27 + $0x4f8] sm:$0xff] %v788_v42  ;;  %v812_v42 = vadd.f32 %v428_v32, %v2300_v30  ;;  %v452_v32 = vld [vmem:[%s1819_s25 + $0x678] sm:$0xff] }
  0xd4   : > { %1173 = vst [vmem:[%s1863_s27 + $0x500] sm:$0xff] %v789_v46  ;;  %v813_v46 = vadd.f32 %v429_v36, %v2306_v35  ;;  %v453_v36 = vld [vmem:[%s1819_s25 + $0x680] sm:$0xff] }
  0xd5   : > { %1174 = vst [vmem:[%s1863_s27 + $0x508] sm:$0xff] %v790_v49  ;;  %v814_v49 = vadd.f32 %v430_v41, %v2312_v39  ;;  %v454_v41 = vld [vmem:[%s1819_s25 + $0x688] sm:$0xff] }
  0xd6   : > { %1175 = vst [vmem:[%s1863_s27 + $0x510] sm:$0xff] %v791_v52  ;;  %v815_v52 = vadd.f32 %v431_v45, %v2318_v44  ;;  %v455_v45 = vld [vmem:[%s1819_s25 + $0x690] sm:$0xff] }
  0xd7   : > { %1176 = vst [vmem:[%s1863_s27 + $0x518] sm:$0xff] %v792_v55  ;;  %v816_v55 = vadd.f32 %v432_v48, %v2324_v47  ;;  %v456_v48 = vld [vmem:[%s1819_s25 + $0x698] sm:$0xff] }
  0xd8   : > { %1177 = vst [vmem:[%s1863_s27 + $0x520] sm:$0xff] %v793_v6  ;;  %v817_v6 = vadd.f32 %v433_v51, %v2330_v50  ;;  %v457_v51 = vld [vmem:[%s1819_s25 + $0x6a0] sm:$0xff] }
  0xd9   : > { %1178 = vst [vmem:[%s1863_s27 + $0x528] sm:$0xff] %v794_v59  ;;  %v818_v59 = vadd.f32 %v434_v54, %v2336_v53  ;;  %v458_v54 = vld [vmem:[%s1819_s25 + $0x6a8] sm:$0xff] }
  0xda   : > { %1179 = vst [vmem:[%s1863_s27 + $0x530] sm:$0xff] %v795_v60  ;;  %v819_v60 = vadd.f32 %v435_v57, %v2342_v56  ;;  %v459_v57 = vld [vmem:[%s1819_s25 + $0x6b0] sm:$0xff] }
  0xdb   : > { %1180 = vst [vmem:[%s1863_s27 + $0x538] sm:$0xff] %v796_v61  ;;  %v820_v61 = vadd.f32 %v436_v7, %v2348_v58  ;;  %v460_v7 = vld [vmem:[%s1819_s25 + $0x6b8] sm:$0xff] }
  0xdc   : > { %1181 = vst [vmem:[%s1863_s27 + $0x540] sm:$0xff] %v797_v62  ;;  %v821_v62 = vadd.f32 %v437_v8, %v2258_v28  ;;  %v461_v8 = vld [vmem:[%s1819_s25 + $0x6c0] sm:$0xff] }
  0xdd   : > { %1182 = vst [vmem:[%s1863_s27 + $0x548] sm:$0xff] %v798_v63  ;;  %v822_v63 = vadd.f32 %v438_v12, %v2264_v5  ;;  %v462_v12 = vld [vmem:[%s1819_s25 + $0x6c8] sm:$0xff] }
  0xde   : > { %1183 = vst [vmem:[%s1863_s27 + $0x550] sm:$0xff] %v799_v0  ;;  %v823_v0 = vadd.f32 %v439_v13, %v2270_v10  ;;  %v463_v13 = vld [vmem:[%s1819_s25 + $0x6d0] sm:$0xff] }
  0xdf   : > { %1184 = vst [vmem:[%s1863_s27 + $0x558] sm:$0xff] %v800_v1  ;;  %v824_v1 = vadd.f32 %v440_v14, %v2276_v15  ;;  %v464_v14 = vld [vmem:[%s1819_s25 + $0x6d8] sm:$0xff] }
  0xe0   : > { %1185 = vst [vmem:[%s1863_s27 + $0x560] sm:$0xff] %v801_v2  ;;  %v825_v2 = vadd.f32 %v441_v16, %v2282_v18  ;;  %v465_v16 = vld [vmem:[%s1819_s25 + $0x6e0] sm:$0xff] }
  0xe1   : > { %1186 = vst [vmem:[%s1863_s27 + $0x568] sm:$0xff] %v802_v3  ;;  %v826_v3 = vadd.f32 %v442_v19, %v2288_v21  ;;  %v466_v19 = vld [vmem:[%s1819_s25 + $0x6e8] sm:$0xff] }
  0xe2   : > { %1187 = vst [vmem:[%s1863_s27 + $0x570] sm:$0xff] %v803_v31  ;;  %v827_v31 = vadd.f32 %v443_v22, %v2294_v26  ;;  %v467_v22 = vld [vmem:[%s1819_s25 + $0x6f0] sm:$0xff] }
  0xe3   : > { %1188 = vst [vmem:[%s1863_s27 + $0x578] sm:$0xff] %v804_v9  ;;  %v828_v9 = vadd.f32 %v444_v25, %v2300_v30  ;;  %v468_v25 = vld [vmem:[%s1819_s25 + $0x6f8] sm:$0xff] }
  0xe4   : > { %1189 = vst [vmem:[%s1863_s27 + $0x580] sm:$0xff] %v805_v11  ;;  %v829_v11 = vadd.f32 %v445_v4, %v2306_v35  ;;  %v469_v4 = vld [vmem:[%s1819_s25 + $0x700] sm:$0xff] }
  0xe5   : > { %1190 = vst [vmem:[%s1863_s27 + $0x588] sm:$0xff] %v806_v17  ;;  %v830_v17 = vadd.f32 %v446_v34, %v2312_v39  ;;  %v470_v34 = vld [vmem:[%s1819_s25 + $0x708] sm:$0xff] }
  0xe6   : > { %1191 = vst [vmem:[%s1863_s27 + $0x590] sm:$0xff] %v807_v20  ;;  %v831_v20 = vadd.f32 %v447_v37, %v2318_v44  ;;  %v471_v37 = vld [vmem:[%s1819_s25 + $0x710] sm:$0xff] }
  0xe7   : > { %1192 = vst [vmem:[%s1863_s27 + $0x598] sm:$0xff] %v808_v24  ;;  %v832_v24 = vadd.f32 %v448_v40, %v2324_v47  ;;  %v472_v40 = vld [vmem:[%s1819_s25 + $0x718] sm:$0xff] }
  0xe8   : > { %1193 = vst [vmem:[%s1863_s27 + $0x5a0] sm:$0xff] %v809_v29  ;;  %v833_v29 = vadd.f32 %v449_v43, %v2330_v50  ;;  %v473_v43 = vld [vmem:[%s1819_s25 + $0x720] sm:$0xff] }
  0xe9   : > { %1194 = vst [vmem:[%s1863_s27 + $0x5a8] sm:$0xff] %v810_v33  ;;  %v834_v33 = vadd.f32 %v450_v23, %v2336_v53  ;;  %v474_v23 = vld [vmem:[%s1819_s25 + $0x728] sm:$0xff] }
  0xea   : > { %1195 = vst [vmem:[%s1863_s27 + $0x5b0] sm:$0xff] %v811_v38  ;;  %v835_v38 = vadd.f32 %v451_v27, %v2342_v56  ;;  %v475_v27 = vld [vmem:[%s1819_s25 + $0x730] sm:$0xff] }
  0xeb   : > { %1196 = vst [vmem:[%s1863_s27 + $0x5b8] sm:$0xff] %v812_v42  ;;  %v836_v42 = vadd.f32 %v452_v32, %v2348_v58  ;;  %v476_v32 = vld [vmem:[%s1819_s25 + $0x738] sm:$0xff] }
  0xec   : > { %1197 = vst [vmem:[%s1863_s27 + $0x5c0] sm:$0xff] %v813_v46  ;;  %v837_v46 = vadd.f32 %v453_v36, %v2258_v28  ;;  %v477_v36 = vld [vmem:[%s1819_s25 + $0x740] sm:$0xff] }
  0xed   : > { %1198 = vst [vmem:[%s1863_s27 + $0x5c8] sm:$0xff] %v814_v49  ;;  %v838_v49 = vadd.f32 %v454_v41, %v2264_v5  ;;  %v478_v41 = vld [vmem:[%s1819_s25 + $0x748] sm:$0xff] }
  0xee   : > { %1199 = vst [vmem:[%s1863_s27 + $0x5d0] sm:$0xff] %v815_v52  ;;  %v839_v52 = vadd.f32 %v455_v45, %v2270_v10  ;;  %v479_v45 = vld [vmem:[%s1819_s25 + $0x750] sm:$0xff] }
  0xef   : > { %1200 = vst [vmem:[%s1863_s27 + $0x5d8] sm:$0xff] %v816_v55  ;;  %v840_v55 = vadd.f32 %v456_v48, %v2276_v15  ;;  %v480_v48 = vld [vmem:[%s1819_s25 + $0x758] sm:$0xff] }
  0xf0   : > { %1201 = vst [vmem:[%s1863_s27 + $0x5e0] sm:$0xff] %v817_v6  ;;  %v841_v6 = vadd.f32 %v457_v51, %v2282_v18  ;;  %v481_v51 = vld [vmem:[%s1819_s25 + $0x760] sm:$0xff] }
  0xf1   : > { %1202 = vst [vmem:[%s1863_s27 + $0x5e8] sm:$0xff] %v818_v59  ;;  %v842_v59 = vadd.f32 %v458_v54, %v2288_v21  ;;  %v482_v54 = vld [vmem:[%s1819_s25 + $0x768] sm:$0xff] }
  0xf2   : > { %1203 = vst [vmem:[%s1863_s27 + $0x5f0] sm:$0xff] %v819_v60  ;;  %v843_v60 = vadd.f32 %v459_v57, %v2294_v26  ;;  %v483_v57 = vld [vmem:[%s1819_s25 + $0x770] sm:$0xff] }
  0xf3   : > { %1204 = vst [vmem:[%s1863_s27 + $0x5f8] sm:$0xff] %v820_v61  ;;  %v844_v61 = vadd.f32 %v460_v7, %v2300_v30  ;;  %v484_v7 = vld [vmem:[%s1819_s25 + $0x778] sm:$0xff] }
  0xf4   : > { %1205 = vst [vmem:[%s1863_s27 + $0x600] sm:$0xff] %v821_v62  ;;  %v845_v62 = vadd.f32 %v461_v8, %v2306_v35  ;;  %v485_v8 = vld [vmem:[%s1819_s25 + $0x780] sm:$0xff] }
  0xf5   : > { %1206 = vst [vmem:[%s1863_s27 + $0x608] sm:$0xff] %v822_v63  ;;  %v846_v63 = vadd.f32 %v462_v12, %v2312_v39  ;;  %v486_v12 = vld [vmem:[%s1819_s25 + $0x788] sm:$0xff] }
  0xf6   : > { %1207 = vst [vmem:[%s1863_s27 + $0x610] sm:$0xff] %v823_v0  ;;  %v847_v0 = vadd.f32 %v463_v13, %v2318_v44  ;;  %v487_v13 = vld [vmem:[%s1819_s25 + $0x790] sm:$0xff] }
  0xf7   : > { %1208 = vst [vmem:[%s1863_s27 + $0x618] sm:$0xff] %v824_v1  ;;  %v848_v1 = vadd.f32 %v464_v14, %v2324_v47  ;;  %v488_v14 = vld [vmem:[%s1819_s25 + $0x798] sm:$0xff] }
  0xf8   : > { %1209 = vst [vmem:[%s1863_s27 + $0x620] sm:$0xff] %v825_v2  ;;  %v849_v2 = vadd.f32 %v465_v16, %v2330_v50  ;;  %v489_v16 = vld [vmem:[%s1819_s25 + $0x7a0] sm:$0xff] }
  0xf9   : > { %1210 = vst [vmem:[%s1863_s27 + $0x628] sm:$0xff] %v826_v3  ;;  %v850_v3 = vadd.f32 %v466_v19, %v2336_v53  ;;  %v490_v19 = vld [vmem:[%s1819_s25 + $0x7a8] sm:$0xff] }
  0xfa   : > { %1211 = vst [vmem:[%s1863_s27 + $0x630] sm:$0xff] %v827_v31  ;;  %v851_v31 = vadd.f32 %v467_v22, %v2342_v56  ;;  %v873_v22 = vadd.f32 %v489_v16, %v2282_v18  ;;  %v514_v16 = vld [vmem:[%s1819_s25 + $0x868] sm:$0xff] }
  0xfb   : > { %1212 = vst [vmem:[%s1863_s27 + $0x638] sm:$0xff] %v828_v9  ;;  %v852_v9 = vadd.f32 %v468_v25, %v2348_v58 }
  0xfc   : > { %1213 = vst [vmem:[%s1863_s27 + $0x640] sm:$0xff] %v829_v11  ;;  %v853_v11 = vadd.f32 %v469_v4, %v2258_v28 }
  0xfd   : > { %1214 = vst [vmem:[%s1863_s27 + $0x648] sm:$0xff] %v830_v17  ;;  %v854_v17 = vadd.f32 %v470_v34, %v2264_v5 }
  0xfe   : > { %1215 = vst [vmem:[%s1863_s27 + $0x650] sm:$0xff] %v831_v20  ;;  %v855_v20 = vadd.f32 %v471_v37, %v2270_v10 }
  0xff   : > { %1216 = vst [vmem:[%s1863_s27 + $0x658] sm:$0xff] %v832_v24  ;;  %v856_v24 = vadd.f32 %v472_v40, %v2276_v15  ;;  %v501_v40 = vld [vmem:[%s1819_s25 + $0x800] sm:$0xff] }
 0x100   : > { %1217 = vst [vmem:[%s1863_s27 + $0x660] sm:$0xff] %v833_v29  ;;  %v857_v29 = vadd.f32 %v473_v43, %v2282_v18  ;;  %v495_v18 = vld [vmem:[%s1819_s25 + $0x7d0] sm:$0xff] }
 0x101   : > { %1218 = vst [vmem:[%s1863_s27 + $0x668] sm:$0xff] %v834_v33  ;;  %v858_v33 = vadd.f32 %v474_v23, %v2288_v21  ;;  %v879_v34 = vadd.f32 %v495_v18, %v2318_v44  ;;  %v519_v18 = vld [vmem:[%s1819_s25 + $0x890] sm:$0xff] }
 0x102   : > { %1219 = vst [vmem:[%s1863_s27 + $0x670] sm:$0xff] %v835_v38  ;;  %v859_v38 = vadd.f32 %v475_v27, %v2294_v26 }
 0x103   : > { %1220 = vst [vmem:[%s1863_s27 + $0x678] sm:$0xff] %v836_v42  ;;  %v860_v42 = vadd.f32 %v476_v32, %v2300_v30 }
 0x104   : > { %1221 = vst [vmem:[%s1863_s27 + $0x680] sm:$0xff] %v837_v46  ;;  %v861_v46 = vadd.f32 %v477_v36, %v2306_v35  ;;  %v506_v36 = vld [vmem:[%s1819_s25 + $0x828] sm:$0xff] }
 0x105   : > { %1222 = vst [vmem:[%s1863_s27 + $0x688] sm:$0xff] %v838_v49  ;;  %v862_v49 = vadd.f32 %v478_v41, %v2312_v39  ;;  %v2726_v41 = vld [vmem:[%s1832_s7 + $0x130] sm:$0xff] }
 0x106   : > { %1223 = vst [vmem:[%s1863_s27 + $0x690] sm:$0xff] %v839_v52  ;;  %v863_v52 = vadd.f32 %v479_v45, %v2318_v44  ;;  %v2690_v44 = vld [vmem:[%s1832_s7 + $0x100] sm:$0xff] }
 0x107   : > { %1224 = vst [vmem:[%s1863_s27 + $0x698] sm:$0xff] %v840_v55  ;;  %v864_v55 = vadd.f32 %v480_v48, %v2324_v47  ;;  %v885_v23 = vadd.f32 %v501_v40, %v2690_v44  ;;  %v508_v48 = vld [vmem:[%s1819_s25 + $0x838] sm:$0xff]  ;;  %v525_v40 = vld [vmem:[%s1819_s25 + $0x8c0] sm:$0xff] }
 0x108   : > { %1225 = vst [vmem:[%s1863_s27 + $0x6a0] sm:$0xff] %v841_v6  ;;  %v865_v6 = vadd.f32 %v481_v51, %v2330_v50  ;;  %v2738_v51 = vld [vmem:[%s1832_s7 + $0x140] sm:$0xff] }
 0x109   : > { %1226 = vst [vmem:[%s1863_s27 + $0x6a8] sm:$0xff] %v842_v59  ;;  %v866_v59 = vadd.f32 %v482_v54, %v2336_v53 }
 0x10a   : > { %1227 = vst [vmem:[%s1863_s27 + $0x6b0] sm:$0xff] %v843_v60  ;;  %v867_v60 = vadd.f32 %v483_v57, %v2342_v56  ;;  %v510_v57 = vld [vmem:[%s1819_s25 + $0x848] sm:$0xff] }
 0x10b   : > { %1228 = vst [vmem:[%s1863_s27 + $0x6b8] sm:$0xff] %v844_v61  ;;  %v868_v61 = vadd.f32 %v484_v7, %v2348_v58  ;;  %v2750_v7 = vld [vmem:[%s1832_s7 + $0x150] sm:$0xff] }
 0x10c   : > { %1229 = vst [vmem:[%s1863_s27 + $0x6c0] sm:$0xff] %v845_v62  ;;  %v869_v62 = vadd.f32 %v485_v8, %v2258_v28  ;;  %v491_v28 = vld [vmem:[%s1819_s25 + $0x7b0] sm:$0xff] }
 0x10d   : > { %1230 = vst [vmem:[%s1863_s27 + $0x6c8] sm:$0xff] %v846_v63  ;;  %v870_v63 = vadd.f32 %v486_v12, %v2264_v5  ;;  %v492_v5 = vld [vmem:[%s1819_s25 + $0x7b8] sm:$0xff]  ;;  %v875_v25 = vadd.f32 %v491_v28, %v2294_v26  ;;  %v497_v26 = vld [vmem:[%s1819_s25 + $0x7e0] sm:$0xff] }
 0x10e   : > { %1231 = vst [vmem:[%s1863_s27 + $0x6d0] sm:$0xff] %v847_v0  ;;  %v871_v0 = vadd.f32 %v487_v13, %v2270_v10  ;;  %v493_v10 = vld [vmem:[%s1819_s25 + $0x7c0] sm:$0xff]  ;;  %v881_v37 = vadd.f32 %v497_v26, %v2330_v50  ;;  %v502_v50 = vld [vmem:[%s1819_s25 + $0x808] sm:$0xff]  ;;  %v512_v12 = vld [vmem:[%s1819_s25 + $0x858] sm:$0xff] }
 0x10f   : > { %1232 = vst [vmem:[%s1863_s27 + $0x6d8] sm:$0xff] %v848_v1  ;;  %v872_v1 = vadd.f32 %v488_v14, %v2276_v15  ;;  %v494_v15 = vld [vmem:[%s1819_s25 + $0x7c8] sm:$0xff]  ;;  %v877_v4 = vadd.f32 %v493_v10, %v2306_v35  ;;  %v499_v35 = vld [vmem:[%s1819_s25 + $0x7f0] sm:$0xff]  ;;  %v2762_v13 = vld [vmem:[%s1832_s7 + $0x160] sm:$0xff] }
 0x110   : > { %1233 = vst [vmem:[%s1863_s27 + $0x6e0] sm:$0xff] %v849_v2  ;;  %v874_v2 = vadd.f32 %v490_v19, %v2288_v21  ;;  %v496_v21 = vld [vmem:[%s1819_s25 + $0x7d8] sm:$0xff]  ;;  %v2774_v19 = vld [vmem:[%s1832_s7 + $0x170] sm:$0xff]  ;;  %v517_v10 = vld [vmem:[%s1819_s25 + $0x880] sm:$0xff] }
 0x111   : > { %1234 = vst [vmem:[%s1863_s27 + $0x6e8] sm:$0xff] %v850_v3  ;;  %v876_v3 = vadd.f32 %v492_v5, %v2300_v30  ;;  %v498_v30 = vld [vmem:[%s1819_s25 + $0x7e8] sm:$0xff]  ;;  %v516_v5 = vld [vmem:[%s1819_s25 + $0x878] sm:$0xff]  ;;  %v521_v26 = vld [vmem:[%s1819_s25 + $0x8a0] sm:$0xff] }
 0x112   : > { %1235 = vst [vmem:[%s1863_s27 + $0x6f0] sm:$0xff] %v851_v31  ;;  %v878_v31 = vadd.f32 %v494_v15, %v2312_v39  ;;  %v500_v39 = vld [vmem:[%s1819_s25 + $0x7f8] sm:$0xff]  ;;  %v518_v15 = vld [vmem:[%s1819_s25 + $0x888] sm:$0xff] }
 0x113   : > { %1236 = vst [vmem:[%s1863_s27 + $0x6f8] sm:$0xff] %v852_v9  ;;  %v880_v9 = vadd.f32 %v496_v21, %v2324_v47  ;;  %v883_v47 = vadd.f32 %v499_v35, %v2342_v56  ;;  %v884_v43 = vadd.f32 %v500_v39, %v2348_v58  ;;  %v504_v56 = vld [vmem:[%s1819_s25 + $0x818] sm:$0xff]  ;;  %v505_v58 = vld [vmem:[%s1819_s25 + $0x820] sm:$0xff]  ;;  %v523_v35 = vld [vmem:[%s1819_s25 + $0x8b0] sm:$0xff] }
 0x114   : > { %1237 = vst [vmem:[%s1863_s27 + $0x700] sm:$0xff] %v853_v11  ;;  %v882_v11 = vadd.f32 %v498_v30, %v2336_v53  ;;  %v503_v53 = vld [vmem:[%s1819_s25 + $0x810] sm:$0xff]  ;;  %v520_v21 = vld [vmem:[%s1819_s25 + $0x898] sm:$0xff]  ;;  %v522_v30 = vld [vmem:[%s1819_s25 + $0x8a8] sm:$0xff] }
 0x115   : > { %1238 = vst [vmem:[%s1863_s27 + $0x708] sm:$0xff] %v854_v17  ;;  %v2696_v17 = vld [vmem:[%s1832_s7 + $0x108] sm:$0xff]  ;;  %v524_v39 = vld [vmem:[%s1819_s25 + $0x8b8] sm:$0xff] }
 0x116   : > { %1239 = vst [vmem:[%s1863_s27 + $0x710] sm:$0xff] %v855_v20  ;;  %v2702_v20 = vld [vmem:[%s1832_s7 + $0x110] sm:$0xff]  ;;  %v886_v27 = vadd.f32 %v502_v50, %v2696_v17  ;;  %v526_v50 = vld [vmem:[%s1819_s25 + $0x8c8] sm:$0xff] }
 0x117   : > { %1240 = vst [vmem:[%s1863_s27 + $0x718] sm:$0xff] %v856_v24  ;;  %v2708_v24 = vld [vmem:[%s1832_s7 + $0x118] sm:$0xff]  ;;  %v887_v32 = vadd.f32 %v503_v53, %v2702_v20  ;;  %v527_v53 = vld [vmem:[%s1819_s25 + $0x8d0] sm:$0xff] }
 0x118   : > { %1241 = vst [vmem:[%s1863_s27 + $0x720] sm:$0xff] %v857_v29  ;;  %v2714_v29 = vld [vmem:[%s1832_s7 + $0x120] sm:$0xff] }
 0x119   : > { %1242 = vst [vmem:[%s1863_s27 + $0x728] sm:$0xff] %v858_v33  ;;  %v2720_v33 = vld [vmem:[%s1832_s7 + $0x128] sm:$0xff]  ;;  %v889_v45 = vadd.f32 %v505_v58, %v2714_v29  ;;  %v529_v58 = vld [vmem:[%s1819_s25 + $0x8e0] sm:$0xff] }
 0x11a   : > { %1243 = vst [vmem:[%s1863_s27 + $0x730] sm:$0xff] %v859_v38  ;;  %v888_v38 = vadd.f32 %v504_v56, %v2708_v24  ;;  %v528_v56 = vld [vmem:[%s1819_s25 + $0x8d8] sm:$0xff] }
 0x11b   : > { %1244 = vst [vmem:[%s1863_s27 + $0x738] sm:$0xff] %v860_v42  ;;  %v507_v42 = vld [vmem:[%s1819_s25 + $0x830] sm:$0xff] }
 0x11c   : > { %1245 = vst [vmem:[%s1863_s27 + $0x740] sm:$0xff] %v861_v46  ;;  %v2732_v46 = vld [vmem:[%s1832_s7 + $0x138] sm:$0xff]  ;;  %v891_v54 = vadd.f32 %v507_v42, %v2726_v41  ;;  %v531_v42 = vld [vmem:[%s1819_s25 + $0x8f0] sm:$0xff] }
 0x11d   : > { %1246 = vst [vmem:[%s1863_s27 + $0x748] sm:$0xff] %v862_v49  ;;  %v890_v49 = vadd.f32 %v506_v36, %v2720_v33  ;;  %v530_v36 = vld [vmem:[%s1819_s25 + $0x8e8] sm:$0xff] }
 0x11e   : > { %1247 = vst [vmem:[%s1863_s27 + $0x750] sm:$0xff] %v863_v52  ;;  %v509_v52 = vld [vmem:[%s1819_s25 + $0x840] sm:$0xff] }
 0x11f   : > { %1248 = vst [vmem:[%s1863_s27 + $0x758] sm:$0xff] %v864_v55  ;;  %v2744_v55 = vld [vmem:[%s1832_s7 + $0x148] sm:$0xff]  ;;  %v893_v8 = vadd.f32 %v509_v52, %v2738_v51  ;;  %v533_v52 = vld [vmem:[%s1819_s25 + $0x900] sm:$0xff] }
 0x120   : > { %1249 = vst [vmem:[%s1863_s27 + $0x760] sm:$0xff] %v865_v6  ;;  %v892_v6 = vadd.f32 %v508_v48, %v2732_v46  ;;  %v532_v48 = vld [vmem:[%s1819_s25 + $0x8f8] sm:$0xff] }
 0x121   : > { %1250 = vst [vmem:[%s1863_s27 + $0x768] sm:$0xff] %v866_v59  ;;  %v511_v59 = vld [vmem:[%s1819_s25 + $0x850] sm:$0xff] }
 0x122   : > { %1251 = vst [vmem:[%s1863_s27 + $0x770] sm:$0xff] %v867_v60  ;;  %v2756_v60 = vld [vmem:[%s1832_s7 + $0x158] sm:$0xff]  ;;  %v895_v14 = vadd.f32 %v511_v59, %v2750_v7  ;;  %v535_v59 = vld [vmem:[%s1819_s25 + $0x910] sm:$0xff] }
 0x123   : > { %1252 = vst [vmem:[%s1863_s27 + $0x778] sm:$0xff] %v868_v61  ;;  %v894_v61 = vadd.f32 %v510_v57, %v2744_v55  ;;  %v534_v57 = vld [vmem:[%s1819_s25 + $0x908] sm:$0xff] }
 0x124   : > { %1253 = vst [vmem:[%s1863_s27 + $0x780] sm:$0xff] %v869_v62  ;;  %v513_v62 = vld [vmem:[%s1819_s25 + $0x860] sm:$0xff] }
 0x125   : > { %1254 = vst [vmem:[%s1863_s27 + $0x788] sm:$0xff] %v870_v63  ;;  %v2768_v63 = vld [vmem:[%s1832_s7 + $0x168] sm:$0xff]  ;;  %v897_v28 = vadd.f32 %v513_v62, %v2762_v13  ;;  %v537_v62 = vld [vmem:[%s1819_s25 + $0x920] sm:$0xff] }
 0x126   : > { %1255 = vst [vmem:[%s1863_s27 + $0x790] sm:$0xff] %v871_v0  ;;  %v896_v0 = vadd.f32 %v512_v12, %v2756_v60  ;;  %v536_v12 = vld [vmem:[%s1819_s25 + $0x918] sm:$0xff] }
 0x127   : > { %1256 = vst [vmem:[%s1863_s27 + $0x798] sm:$0xff] %v872_v1  ;;  %v515_v1 = vld [vmem:[%s1819_s25 + $0x870] sm:$0xff] }
 0x128   : > { %1257 = vst [vmem:[%s1863_s27 + $0x7a0] sm:$0xff] %v873_v22  ;;  %v2780_v22 = vld [vmem:[%s1832_s7 + $0x178] sm:$0xff] }
 0x129   : > { %1258 = vst [vmem:[%s1863_s27 + $0x7a8] sm:$0xff] %v874_v2  ;;  %v898_v2 = vadd.f32 %v514_v16, %v2768_v63  ;;  %v538_v16 = vld [vmem:[%s1819_s25 + $0x928] sm:$0xff] }
 0x12a   : > { %1259 = vst [vmem:[%s1863_s27 + $0x7b0] sm:$0xff] %v875_v25  ;;  %v899_v25 = vadd.f32 %v515_v1, %v2774_v19  ;;  %v539_v1 = vld [vmem:[%s1819_s25 + $0x930] sm:$0xff] }
 0x12b   : > { %1260 = vst [vmem:[%s1863_s27 + $0x7b8] sm:$0xff] %v876_v3  ;;  %v900_v3 = vadd.f32 %v516_v5, %v2780_v22  ;;  %v540_v5 = vld [vmem:[%s1819_s25 + $0x938] sm:$0xff] }
 0x12c   : > { %1261 = vst [vmem:[%s1863_s27 + $0x7c0] sm:$0xff] %v877_v4  ;;  %v901_v4 = vadd.f32 %v517_v10, %v2690_v44  ;;  %v541_v10 = vld [vmem:[%s1819_s25 + $0x940] sm:$0xff] }
 0x12d   : > { %1262 = vst [vmem:[%s1863_s27 + $0x7c8] sm:$0xff] %v878_v31  ;;  %v902_v31 = vadd.f32 %v518_v15, %v2696_v17  ;;  %v542_v15 = vld [vmem:[%s1819_s25 + $0x948] sm:$0xff] }
 0x12e   : > { %1263 = vst [vmem:[%s1863_s27 + $0x7d0] sm:$0xff] %v879_v34  ;;  %v903_v34 = vadd.f32 %v519_v18, %v2702_v20  ;;  %v543_v18 = vld [vmem:[%s1819_s25 + $0x950] sm:$0xff] }
 0x12f   : > { %1264 = vst [vmem:[%s1863_s27 + $0x7d8] sm:$0xff] %v880_v9  ;;  %v904_v9 = vadd.f32 %v520_v21, %v2708_v24  ;;  %v544_v21 = vld [vmem:[%s1819_s25 + $0x958] sm:$0xff] }
 0x130   : > { %1265 = vst [vmem:[%s1863_s27 + $0x7e0] sm:$0xff] %v881_v37  ;;  %v905_v37 = vadd.f32 %v521_v26, %v2714_v29  ;;  %v545_v26 = vld [vmem:[%s1819_s25 + $0x960] sm:$0xff] }
 0x131   : > { %1266 = vst [vmem:[%s1863_s27 + $0x7e8] sm:$0xff] %v882_v11  ;;  %v906_v11 = vadd.f32 %v522_v30, %v2720_v33  ;;  %v546_v30 = vld [vmem:[%s1819_s25 + $0x968] sm:$0xff] }
 0x132   : > { %1267 = vst [vmem:[%s1863_s27 + $0x7f0] sm:$0xff] %v883_v47  ;;  %v907_v47 = vadd.f32 %v523_v35, %v2726_v41  ;;  %v547_v35 = vld [vmem:[%s1819_s25 + $0x970] sm:$0xff] }
 0x133   : > { %1268 = vst [vmem:[%s1863_s27 + $0x7f8] sm:$0xff] %v884_v43  ;;  %v908_v43 = vadd.f32 %v524_v39, %v2732_v46  ;;  %v548_v39 = vld [vmem:[%s1819_s25 + $0x978] sm:$0xff] }
 0x134   : > { %1269 = vst [vmem:[%s1863_s27 + $0x800] sm:$0xff] %v885_v23  ;;  %v909_v23 = vadd.f32 %v525_v40, %v2738_v51  ;;  %v549_v40 = vld [vmem:[%s1819_s25 + $0x980] sm:$0xff] }
 0x135   : > { %1270 = vst [vmem:[%s1863_s27 + $0x808] sm:$0xff] %v886_v27  ;;  %v910_v27 = vadd.f32 %v526_v50, %v2744_v55  ;;  %v550_v50 = vld [vmem:[%s1819_s25 + $0x988] sm:$0xff] }
 0x136   : > { %1271 = vst [vmem:[%s1863_s27 + $0x810] sm:$0xff] %v887_v32  ;;  %v911_v32 = vadd.f32 %v527_v53, %v2750_v7  ;;  %v551_v53 = vld [vmem:[%s1819_s25 + $0x990] sm:$0xff] }
 0x137   : > { %1272 = vst [vmem:[%s1863_s27 + $0x818] sm:$0xff] %v888_v38  ;;  %v912_v38 = vadd.f32 %v528_v56, %v2756_v60  ;;  %v552_v56 = vld [vmem:[%s1819_s25 + $0x998] sm:$0xff] }
 0x138   : > { %1273 = vst [vmem:[%s1863_s27 + $0x820] sm:$0xff] %v889_v45  ;;  %v913_v45 = vadd.f32 %v529_v58, %v2762_v13  ;;  %v553_v58 = vld [vmem:[%s1819_s25 + $0x9a0] sm:$0xff] }
 0x139   : > { %1274 = vst [vmem:[%s1863_s27 + $0x828] sm:$0xff] %v890_v49  ;;  %v914_v49 = vadd.f32 %v530_v36, %v2768_v63  ;;  %v554_v36 = vld [vmem:[%s1819_s25 + $0x9a8] sm:$0xff] }
 0x13a   : > { %1275 = vst [vmem:[%s1863_s27 + $0x830] sm:$0xff] %v891_v54  ;;  %v915_v54 = vadd.f32 %v531_v42, %v2774_v19  ;;  %v555_v42 = vld [vmem:[%s1819_s25 + $0x9b0] sm:$0xff] }
 0x13b   : > { %1276 = vst [vmem:[%s1863_s27 + $0x838] sm:$0xff] %v892_v6  ;;  %v916_v6 = vadd.f32 %v532_v48, %v2780_v22  ;;  %v556_v48 = vld [vmem:[%s1819_s25 + $0x9b8] sm:$0xff] }
 0x13c   : > { %1277 = vst [vmem:[%s1863_s27 + $0x840] sm:$0xff] %v893_v8  ;;  %v917_v8 = vadd.f32 %v533_v52, %v2690_v44  ;;  %v557_v52 = vld [vmem:[%s1819_s25 + $0x9c0] sm:$0xff] }
 0x13d   : > { %1278 = vst [vmem:[%s1863_s27 + $0x848] sm:$0xff] %v894_v61  ;;  %v918_v61 = vadd.f32 %v534_v57, %v2696_v17  ;;  %v558_v57 = vld [vmem:[%s1819_s25 + $0x9c8] sm:$0xff] }
 0x13e   : > { %1279 = vst [vmem:[%s1863_s27 + $0x850] sm:$0xff] %v895_v14  ;;  %v919_v14 = vadd.f32 %v535_v59, %v2702_v20  ;;  %v559_v59 = vld [vmem:[%s1819_s25 + $0x9d0] sm:$0xff] }
 0x13f   : > { %1280 = vst [vmem:[%s1863_s27 + $0x858] sm:$0xff] %v896_v0  ;;  %v920_v0 = vadd.f32 %v536_v12, %v2708_v24  ;;  %v560_v12 = vld [vmem:[%s1819_s25 + $0x9d8] sm:$0xff] }
 0x140   : > { %1281 = vst [vmem:[%s1863_s27 + $0x860] sm:$0xff] %v897_v28  ;;  %v921_v28 = vadd.f32 %v537_v62, %v2714_v29  ;;  %v561_v62 = vld [vmem:[%s1819_s25 + $0x9e0] sm:$0xff] }
 0x141   : > { %1282 = vst [vmem:[%s1863_s27 + $0x868] sm:$0xff] %v898_v2  ;;  %v922_v2 = vadd.f32 %v538_v16, %v2720_v33  ;;  %v562_v16 = vld [vmem:[%s1819_s25 + $0x9e8] sm:$0xff] }
 0x142   : > { %1283 = vst [vmem:[%s1863_s27 + $0x870] sm:$0xff] %v899_v25  ;;  %v923_v25 = vadd.f32 %v539_v1, %v2726_v41  ;;  %v563_v1 = vld [vmem:[%s1819_s25 + $0x9f0] sm:$0xff] }
 0x143   : > { %1284 = vst [vmem:[%s1863_s27 + $0x878] sm:$0xff] %v900_v3  ;;  %v924_v3 = vadd.f32 %v540_v5, %v2732_v46  ;;  %v564_v5 = vld [vmem:[%s1819_s25 + $0x9f8] sm:$0xff] }
 0x144   : > { %1285 = vst [vmem:[%s1863_s27 + $0x880] sm:$0xff] %v901_v4  ;;  %v925_v4 = vadd.f32 %v541_v10, %v2738_v51  ;;  %v565_v10 = vld [vmem:[%s1819_s25 + $0xa00] sm:$0xff] }
 0x145   : > { %1286 = vst [vmem:[%s1863_s27 + $0x888] sm:$0xff] %v902_v31  ;;  %v926_v31 = vadd.f32 %v542_v15, %v2744_v55  ;;  %v566_v15 = vld [vmem:[%s1819_s25 + $0xa08] sm:$0xff] }
 0x146   : > { %1287 = vst [vmem:[%s1863_s27 + $0x890] sm:$0xff] %v903_v34  ;;  %v927_v34 = vadd.f32 %v543_v18, %v2750_v7  ;;  %v567_v18 = vld [vmem:[%s1819_s25 + $0xa10] sm:$0xff] }
 0x147   : > { %1288 = vst [vmem:[%s1863_s27 + $0x898] sm:$0xff] %v904_v9  ;;  %v928_v9 = vadd.f32 %v544_v21, %v2756_v60  ;;  %v568_v21 = vld [vmem:[%s1819_s25 + $0xa18] sm:$0xff] }
 0x148   : > { %1289 = vst [vmem:[%s1863_s27 + $0x8a0] sm:$0xff] %v905_v37  ;;  %v929_v37 = vadd.f32 %v545_v26, %v2762_v13  ;;  %v569_v26 = vld [vmem:[%s1819_s25 + $0xa20] sm:$0xff] }
 0x149   : > { %1290 = vst [vmem:[%s1863_s27 + $0x8a8] sm:$0xff] %v906_v11  ;;  %v930_v11 = vadd.f32 %v546_v30, %v2768_v63  ;;  %v570_v30 = vld [vmem:[%s1819_s25 + $0xa28] sm:$0xff] }
 0x14a   : > { %1291 = vst [vmem:[%s1863_s27 + $0x8b0] sm:$0xff] %v907_v47  ;;  %v931_v47 = vadd.f32 %v547_v35, %v2774_v19  ;;  %v571_v35 = vld [vmem:[%s1819_s25 + $0xa30] sm:$0xff] }
 0x14b   : > { %1292 = vst [vmem:[%s1863_s27 + $0x8b8] sm:$0xff] %v908_v43  ;;  %v932_v43 = vadd.f32 %v548_v39, %v2780_v22  ;;  %v572_v39 = vld [vmem:[%s1819_s25 + $0xa38] sm:$0xff] }
 0x14c   : > { %1293 = vst [vmem:[%s1863_s27 + $0x8c0] sm:$0xff] %v909_v23  ;;  %v933_v23 = vadd.f32 %v549_v40, %v2690_v44  ;;  %v573_v40 = vld [vmem:[%s1819_s25 + $0xa40] sm:$0xff] }
 0x14d   : > { %1294 = vst [vmem:[%s1863_s27 + $0x8c8] sm:$0xff] %v910_v27  ;;  %v934_v27 = vadd.f32 %v550_v50, %v2696_v17  ;;  %v574_v50 = vld [vmem:[%s1819_s25 + $0xa48] sm:$0xff] }
 0x14e   : > { %1295 = vst [vmem:[%s1863_s27 + $0x8d0] sm:$0xff] %v911_v32  ;;  %v935_v32 = vadd.f32 %v551_v53, %v2702_v20  ;;  %v575_v53 = vld [vmem:[%s1819_s25 + $0xa50] sm:$0xff] }
 0x14f   : > { %1296 = vst [vmem:[%s1863_s27 + $0x8d8] sm:$0xff] %v912_v38  ;;  %v936_v38 = vadd.f32 %v552_v56, %v2708_v24  ;;  %v576_v56 = vld [vmem:[%s1819_s25 + $0xa58] sm:$0xff] }
 0x150   : > { %1297 = vst [vmem:[%s1863_s27 + $0x8e0] sm:$0xff] %v913_v45  ;;  %v937_v45 = vadd.f32 %v553_v58, %v2714_v29  ;;  %v577_v58 = vld [vmem:[%s1819_s25 + $0xa60] sm:$0xff] }
 0x151   : > { %1298 = vst [vmem:[%s1863_s27 + $0x8e8] sm:$0xff] %v914_v49  ;;  %v938_v49 = vadd.f32 %v554_v36, %v2720_v33  ;;  %v578_v36 = vld [vmem:[%s1819_s25 + $0xa68] sm:$0xff] }
 0x152   : > { %1299 = vst [vmem:[%s1863_s27 + $0x8f0] sm:$0xff] %v915_v54  ;;  %v939_v54 = vadd.f32 %v555_v42, %v2726_v41  ;;  %v579_v42 = vld [vmem:[%s1819_s25 + $0xa70] sm:$0xff] }
 0x153   : > { %1300 = vst [vmem:[%s1863_s27 + $0x8f8] sm:$0xff] %v916_v6  ;;  %v940_v6 = vadd.f32 %v556_v48, %v2732_v46  ;;  %v580_v48 = vld [vmem:[%s1819_s25 + $0xa78] sm:$0xff] }
 0x154   : > { %1301 = vst [vmem:[%s1863_s27 + $0x900] sm:$0xff] %v917_v8  ;;  %v941_v8 = vadd.f32 %v557_v52, %v2738_v51  ;;  %v581_v52 = vld [vmem:[%s1819_s25 + $0xa80] sm:$0xff] }
 0x155   : > { %1302 = vst [vmem:[%s1863_s27 + $0x908] sm:$0xff] %v918_v61  ;;  %v942_v61 = vadd.f32 %v558_v57, %v2744_v55  ;;  %v582_v57 = vld [vmem:[%s1819_s25 + $0xa88] sm:$0xff] }
 0x156   : > { %1303 = vst [vmem:[%s1863_s27 + $0x910] sm:$0xff] %v919_v14  ;;  %v943_v14 = vadd.f32 %v559_v59, %v2750_v7  ;;  %v583_v59 = vld [vmem:[%s1819_s25 + $0xa90] sm:$0xff] }
 0x157   : > { %1304 = vst [vmem:[%s1863_s27 + $0x918] sm:$0xff] %v920_v0  ;;  %v944_v0 = vadd.f32 %v560_v12, %v2756_v60  ;;  %v584_v12 = vld [vmem:[%s1819_s25 + $0xa98] sm:$0xff] }
 0x158   : > { %1305 = vst [vmem:[%s1863_s27 + $0x920] sm:$0xff] %v921_v28  ;;  %v945_v28 = vadd.f32 %v561_v62, %v2762_v13  ;;  %v585_v62 = vld [vmem:[%s1819_s25 + $0xaa0] sm:$0xff] }
 0x159   : > { %1306 = vst [vmem:[%s1863_s27 + $0x928] sm:$0xff] %v922_v2  ;;  %v946_v2 = vadd.f32 %v562_v16, %v2768_v63  ;;  %v586_v16 = vld [vmem:[%s1819_s25 + $0xaa8] sm:$0xff] }
 0x15a   : > { %1307 = vst [vmem:[%s1863_s27 + $0x930] sm:$0xff] %v923_v25  ;;  %v947_v25 = vadd.f32 %v563_v1, %v2774_v19  ;;  %v587_v1 = vld [vmem:[%s1819_s25 + $0xab0] sm:$0xff] }
 0x15b   : > { %1308 = vst [vmem:[%s1863_s27 + $0x938] sm:$0xff] %v924_v3  ;;  %v948_v3 = vadd.f32 %v564_v5, %v2780_v22  ;;  %v588_v5 = vld [vmem:[%s1819_s25 + $0xab8] sm:$0xff] }
 0x15c   : > { %1309 = vst [vmem:[%s1863_s27 + $0x940] sm:$0xff] %v925_v4  ;;  %v949_v4 = vadd.f32 %v565_v10, %v2690_v44  ;;  %v589_v10 = vld [vmem:[%s1819_s25 + $0xac0] sm:$0xff] }
 0x15d   : > { %1310 = vst [vmem:[%s1863_s27 + $0x948] sm:$0xff] %v926_v31  ;;  %v950_v31 = vadd.f32 %v566_v15, %v2696_v17  ;;  %v590_v15 = vld [vmem:[%s1819_s25 + $0xac8] sm:$0xff] }
 0x15e   : > { %1311 = vst [vmem:[%s1863_s27 + $0x950] sm:$0xff] %v927_v34  ;;  %v951_v34 = vadd.f32 %v567_v18, %v2702_v20  ;;  %v591_v18 = vld [vmem:[%s1819_s25 + $0xad0] sm:$0xff] }
 0x15f   : > { %1312 = vst [vmem:[%s1863_s27 + $0x958] sm:$0xff] %v928_v9  ;;  %v952_v9 = vadd.f32 %v568_v21, %v2708_v24  ;;  %v592_v21 = vld [vmem:[%s1819_s25 + $0xad8] sm:$0xff] }
 0x160   : > { %1313 = vst [vmem:[%s1863_s27 + $0x960] sm:$0xff] %v929_v37  ;;  %v953_v37 = vadd.f32 %v569_v26, %v2714_v29  ;;  %v593_v26 = vld [vmem:[%s1819_s25 + $0xae0] sm:$0xff] }
 0x161   : > { %1314 = vst [vmem:[%s1863_s27 + $0x968] sm:$0xff] %v930_v11  ;;  %v954_v11 = vadd.f32 %v570_v30, %v2720_v33  ;;  %v594_v30 = vld [vmem:[%s1819_s25 + $0xae8] sm:$0xff] }
 0x162   : > { %1315 = vst [vmem:[%s1863_s27 + $0x970] sm:$0xff] %v931_v47  ;;  %v955_v47 = vadd.f32 %v571_v35, %v2726_v41  ;;  %v595_v35 = vld [vmem:[%s1819_s25 + $0xaf0] sm:$0xff] }
 0x163   : > { %1316 = vst [vmem:[%s1863_s27 + $0x978] sm:$0xff] %v932_v43  ;;  %v956_v43 = vadd.f32 %v572_v39, %v2732_v46  ;;  %v596_v39 = vld [vmem:[%s1819_s25 + $0xaf8] sm:$0xff] }
 0x164   : > { %1317 = vst [vmem:[%s1863_s27 + $0x980] sm:$0xff] %v933_v23  ;;  %v957_v23 = vadd.f32 %v573_v40, %v2738_v51  ;;  %v597_v40 = vld [vmem:[%s1819_s25 + $0xb00] sm:$0xff] }
 0x165   : > { %1318 = vst [vmem:[%s1863_s27 + $0x988] sm:$0xff] %v934_v27  ;;  %v958_v27 = vadd.f32 %v574_v50, %v2744_v55  ;;  %v598_v50 = vld [vmem:[%s1819_s25 + $0xb08] sm:$0xff] }
 0x166   : > { %1319 = vst [vmem:[%s1863_s27 + $0x990] sm:$0xff] %v935_v32  ;;  %v959_v32 = vadd.f32 %v575_v53, %v2750_v7  ;;  %v599_v53 = vld [vmem:[%s1819_s25 + $0xb10] sm:$0xff] }
 0x167   : > { %1320 = vst [vmem:[%s1863_s27 + $0x998] sm:$0xff] %v936_v38  ;;  %v960_v38 = vadd.f32 %v576_v56, %v2756_v60  ;;  %v600_v56 = vld [vmem:[%s1819_s25 + $0xb18] sm:$0xff] }
 0x168   : > { %1321 = vst [vmem:[%s1863_s27 + $0x9a0] sm:$0xff] %v937_v45  ;;  %v961_v45 = vadd.f32 %v577_v58, %v2762_v13  ;;  %v601_v58 = vld [vmem:[%s1819_s25 + $0xb20] sm:$0xff] }
 0x169   : > { %1322 = vst [vmem:[%s1863_s27 + $0x9a8] sm:$0xff] %v938_v49  ;;  %v962_v49 = vadd.f32 %v578_v36, %v2768_v63  ;;  %v602_v36 = vld [vmem:[%s1819_s25 + $0xb28] sm:$0xff] }
 0x16a   : > { %1323 = vst [vmem:[%s1863_s27 + $0x9b0] sm:$0xff] %v939_v54  ;;  %v963_v54 = vadd.f32 %v579_v42, %v2774_v19  ;;  %v603_v42 = vld [vmem:[%s1819_s25 + $0xb30] sm:$0xff] }
 0x16b   : > { %1324 = vst [vmem:[%s1863_s27 + $0x9b8] sm:$0xff] %v940_v6  ;;  %v964_v6 = vadd.f32 %v580_v48, %v2780_v22  ;;  %v604_v48 = vld [vmem:[%s1819_s25 + $0xb38] sm:$0xff] }
 0x16c   : > { %1325 = vst [vmem:[%s1863_s27 + $0x9c0] sm:$0xff] %v941_v8  ;;  %v965_v8 = vadd.f32 %v581_v52, %v2690_v44  ;;  %v605_v52 = vld [vmem:[%s1819_s25 + $0xb40] sm:$0xff] }
 0x16d   : > { %1326 = vst [vmem:[%s1863_s27 + $0x9c8] sm:$0xff] %v942_v61  ;;  %v966_v61 = vadd.f32 %v582_v57, %v2696_v17  ;;  %v606_v57 = vld [vmem:[%s1819_s25 + $0xb48] sm:$0xff] }
 0x16e   : > { %1327 = vst [vmem:[%s1863_s27 + $0x9d0] sm:$0xff] %v943_v14  ;;  %v967_v14 = vadd.f32 %v583_v59, %v2702_v20  ;;  %v607_v59 = vld [vmem:[%s1819_s25 + $0xb50] sm:$0xff] }
 0x16f   : > { %1328 = vst [vmem:[%s1863_s27 + $0x9d8] sm:$0xff] %v944_v0  ;;  %v968_v0 = vadd.f32 %v584_v12, %v2708_v24  ;;  %v608_v12 = vld [vmem:[%s1819_s25 + $0xb58] sm:$0xff] }
 0x170   : > { %1329 = vst [vmem:[%s1863_s27 + $0x9e0] sm:$0xff] %v945_v28  ;;  %v969_v28 = vadd.f32 %v585_v62, %v2714_v29  ;;  %v609_v62 = vld [vmem:[%s1819_s25 + $0xb60] sm:$0xff] }
 0x171   : > { %1330 = vst [vmem:[%s1863_s27 + $0x9e8] sm:$0xff] %v946_v2  ;;  %v970_v2 = vadd.f32 %v586_v16, %v2720_v33  ;;  %v610_v16 = vld [vmem:[%s1819_s25 + $0xb68] sm:$0xff] }
 0x172   : > { %1331 = vst [vmem:[%s1863_s27 + $0x9f0] sm:$0xff] %v947_v25  ;;  %v971_v25 = vadd.f32 %v587_v1, %v2726_v41  ;;  %v611_v1 = vld [vmem:[%s1819_s25 + $0xb70] sm:$0xff] }
 0x173   : > { %1332 = vst [vmem:[%s1863_s27 + $0x9f8] sm:$0xff] %v948_v3  ;;  %v972_v3 = vadd.f32 %v588_v5, %v2732_v46  ;;  %v612_v5 = vld [vmem:[%s1819_s25 + $0xb78] sm:$0xff] }
 0x174   : > { %1333 = vst [vmem:[%s1863_s27 + $0xa00] sm:$0xff] %v949_v4  ;;  %v973_v4 = vadd.f32 %v589_v10, %v2738_v51  ;;  %v613_v10 = vld [vmem:[%s1819_s25 + $0xb80] sm:$0xff] }
 0x175   : > { %1334 = vst [vmem:[%s1863_s27 + $0xa08] sm:$0xff] %v950_v31  ;;  %v974_v31 = vadd.f32 %v590_v15, %v2744_v55  ;;  %v614_v15 = vld [vmem:[%s1819_s25 + $0xb88] sm:$0xff] }
 0x176   : > { %1335 = vst [vmem:[%s1863_s27 + $0xa10] sm:$0xff] %v951_v34  ;;  %v975_v34 = vadd.f32 %v591_v18, %v2750_v7  ;;  %v615_v18 = vld [vmem:[%s1819_s25 + $0xb90] sm:$0xff] }
 0x177   : > { %1336 = vst [vmem:[%s1863_s27 + $0xa18] sm:$0xff] %v952_v9  ;;  %v976_v9 = vadd.f32 %v592_v21, %v2756_v60  ;;  %v616_v21 = vld [vmem:[%s1819_s25 + $0xb98] sm:$0xff] }
 0x178   : > { %1337 = vst [vmem:[%s1863_s27 + $0xa20] sm:$0xff] %v953_v37  ;;  %v977_v37 = vadd.f32 %v593_v26, %v2762_v13  ;;  %v617_v26 = vld [vmem:[%s1819_s25 + $0xba0] sm:$0xff] }
 0x179   : > { %1338 = vst [vmem:[%s1863_s27 + $0xa28] sm:$0xff] %v954_v11  ;;  %v978_v11 = vadd.f32 %v594_v30, %v2768_v63  ;;  %v618_v30 = vld [vmem:[%s1819_s25 + $0xba8] sm:$0xff] }
 0x17a   : > { %1339 = vst [vmem:[%s1863_s27 + $0xa30] sm:$0xff] %v955_v47  ;;  %v979_v47 = vadd.f32 %v595_v35, %v2774_v19  ;;  %v1001_v35 = vadd.f32 %v617_v26, %v2714_v29 }
 0x17b   : > { %1340 = vst [vmem:[%s1863_s27 + $0xa38] sm:$0xff] %v956_v43  ;;  %v980_v43 = vadd.f32 %v596_v39, %v2780_v22  ;;  %v621_v39 = vld [vmem:[%s1819_s25 + $0xbc0] sm:$0xff] }
 0x17c   : > { %1341 = vst [vmem:[%s1863_s27 + $0xa40] sm:$0xff] %v957_v23  ;;  %v981_v23 = vadd.f32 %v597_v40, %v2690_v44  ;;  %v1005_v40 = vadd.f32 %v621_v39, %v2738_v51 }
 0x17d   : > { %1342 = vst [vmem:[%s1863_s27 + $0xa48] sm:$0xff] %v958_v27  ;;  %v982_v27 = vadd.f32 %v598_v50, %v2696_v17 }
 0x17e   : > { %1343 = vst [vmem:[%s1863_s27 + $0xa50] sm:$0xff] %v959_v32  ;;  %v983_v32 = vadd.f32 %v599_v53, %v2702_v20  ;;  %v628_v53 = vld [vmem:[%s1819_s25 + $0xbf8] sm:$0xff] }
 0x17f   : > { %1344 = vst [vmem:[%s1863_s27 + $0xa58] sm:$0xff] %v960_v38  ;;  %v984_v38 = vadd.f32 %v600_v56, %v2708_v24 }
 0x180   : > { %1345 = vst [vmem:[%s1863_s27 + $0xa60] sm:$0xff] %v961_v45  ;;  %v985_v45 = vadd.f32 %v601_v58, %v2714_v29  ;;  %v623_v29 = vld [vmem:[%s1819_s25 + $0xbd0] sm:$0xff] }
 0x181   : > { %1346 = vst [vmem:[%s1863_s27 + $0xa68] sm:$0xff] %v962_v49  ;;  %v986_v49 = vadd.f32 %v602_v36, %v2720_v33  ;;  %v1007_v50 = vadd.f32 %v623_v29, %v2750_v7 }
 0x182   : > { %1347 = vst [vmem:[%s1863_s27 + $0xa70] sm:$0xff] %v963_v54  ;;  %v987_v54 = vadd.f32 %v603_v42, %v2726_v41 }
 0x183   : > { %1348 = vst [vmem:[%s1863_s27 + $0xa78] sm:$0xff] %v964_v6  ;;  %v988_v6 = vadd.f32 %v604_v48, %v2732_v46 }
 0x184   : > { %1349 = vst [vmem:[%s1863_s27 + $0xa80] sm:$0xff] %v965_v8  ;;  %v989_v8 = vadd.f32 %v605_v52, %v2738_v51  ;;  %v627_v51 = vld [vmem:[%s1819_s25 + $0xbf0] sm:$0xff] }
 0x185   : > { %1350 = vst [vmem:[%s1863_s27 + $0xa88] sm:$0xff] %v966_v61  ;;  %v990_v61 = vadd.f32 %v606_v57, %v2744_v55 }
 0x186   : > { %1351 = vst [vmem:[%s1863_s27 + $0xa90] sm:$0xff] %v967_v14  ;;  %v991_v14 = vadd.f32 %v607_v59, %v2750_v7 }
 0x187   : > { %1352 = vst [vmem:[%s1863_s27 + $0xa98] sm:$0xff] %v968_v0  ;;  %v992_v0 = vadd.f32 %v608_v12, %v2756_v60 }
 0x188   : > { %1353 = vst [vmem:[%s1863_s27 + $0xaa0] sm:$0xff] %v969_v28  ;;  %v993_v28 = vadd.f32 %v609_v62, %v2762_v13 }
 0x189   : > { %1354 = vst [vmem:[%s1863_s27 + $0xaa8] sm:$0xff] %v970_v2  ;;  %v994_v2 = vadd.f32 %v610_v16, %v2768_v63 }
 0x18a   : > { %1355 = vst [vmem:[%s1863_s27 + $0xab0] sm:$0xff] %v971_v25  ;;  %v995_v25 = vadd.f32 %v611_v1, %v2774_v19 }
 0x18b   : > { %1356 = vst [vmem:[%s1863_s27 + $0xab8] sm:$0xff] %v972_v3  ;;  %v996_v3 = vadd.f32 %v612_v5, %v2780_v22 }
 0x18c   : > { %1357 = vst [vmem:[%s1863_s27 + $0xac0] sm:$0xff] %v973_v4  ;;  %v997_v4 = vadd.f32 %v613_v10, %v2690_v44  ;;  %v619_v44 = vld [vmem:[%s1819_s25 + $0xbb0] sm:$0xff] }
 0x18d   : > { %1358 = vst [vmem:[%s1863_s27 + $0xac8] sm:$0xff] %v974_v31  ;;  %v998_v31 = vadd.f32 %v614_v15, %v2696_v17  ;;  %v620_v17 = vld [vmem:[%s1819_s25 + $0xbb8] sm:$0xff] }
 0x18e   : > { %1359 = vst [vmem:[%s1863_s27 + $0xad0] sm:$0xff] %v975_v34  ;;  %v999_v34 = vadd.f32 %v615_v18, %v2702_v20  ;;  %v1003_v20 = vadd.f32 %v619_v44, %v2726_v41  ;;  %v625_v41 = vld [vmem:[%s1819_s25 + $0xbe0] sm:$0xff] }
 0x18f   : > { %1360 = vst [vmem:[%s1863_s27 + $0xad8] sm:$0xff] %v976_v9  ;;  %v1000_v9 = vadd.f32 %v616_v21, %v2708_v24  ;;  %v1004_v24 = vadd.f32 %v620_v17, %v2732_v46 }
 0x190   : > { %1361 = vst [vmem:[%s1863_s27 + $0xae0] sm:$0xff] %v977_v37  ;;  %v1002_v37 = vadd.f32 %v618_v30, %v2720_v33  ;;  %v624_v33 = vld [vmem:[%s1819_s25 + $0xbd8] sm:$0xff] }
 0x191   : > { %1362 = vst [vmem:[%s1863_s27 + $0xae8] sm:$0xff] %v978_v11  ;;  %v622_v11 = vld [vmem:[%s1819_s25 + $0xbc8] sm:$0xff]  ;;  %v1008_v46 = vadd.f32 %v624_v33, %v2756_v60  ;;  %v1012_v60 = vadd.f32 %v628_v53, %v2780_v22 }
 0x192   : > { %1363 = vst [vmem:[%s1863_s27 + $0xaf0] sm:$0xff] %v979_v47  ;;  %v1006_v47 = vadd.f32 %v622_v11, %v2744_v55  ;;  %v1009_v55 = vadd.f32 %v625_v41, %v2762_v13 }
 0x193   : > { %1364 = vst [vmem:[%s1863_s27 + $0xaf8] sm:$0xff] %v980_v43  ;;  %v626_v43 = vld [vmem:[%s1819_s25 + $0xbe8] sm:$0xff]  ;;  %s1647_s25 = scalar_lea.hbm %s3171_s3, 6144 }
 0x194   : > { %1365 = vst [vmem:[%s1863_s27 + $0xb00] sm:$0xff] %v981_v23  ;;  %v1010_v7 = vadd.f32 %v626_v43, %v2768_v63  ;;  %v1011_v23 = vadd.f32 %v627_v51, %v2774_v19  ;;  %p1649_p8 = scmp.lt.s32.totalorder %s1647_s25, %s1643_s15 }
 0x195   : > { %1366 = vst [vmem:[%s1863_s27 + $0xb08] sm:$0xff] %v982_v27 }
 0x196   : > { %1367 = vst [vmem:[%s1863_s27 + $0xb10] sm:$0xff] %v983_v32  ;;  %p1650_p10 = por %p1649_p8, %p1648_p7 }
 0x197   : > { %1368 = vst [vmem:[%s1863_s27 + $0xb18] sm:$0xff] %v984_v38 }
 0x198   : > { %1369 = vst [vmem:[%s1863_s27 + $0xb20] sm:$0xff] %v985_v45  ;;  %p1651_p13 = pnand %p1650_p10, %p1646_p6 }
 0x199   : > { %1370 = vst [vmem:[%s1863_s27 + $0xb28] sm:$0xff] %v986_v49 }
 0x19a   : > { %1371 = vst [vmem:[%s1863_s27 + $0xb30] sm:$0xff] %v987_v54 }
 0x19b   : > { %1372 = vst [vmem:[%s1863_s27 + $0xb38] sm:$0xff] %v988_v6 }
 0x19c   : > { %1373 = vst [vmem:[%s1863_s27 + $0xb40] sm:$0xff] %v989_v8 }
 0x19d   : > { %1374 = vst [vmem:[%s1863_s27 + $0xb48] sm:$0xff] %v990_v61 }
 0x19e   : > { %1375 = vst [vmem:[%s1863_s27 + $0xb50] sm:$0xff] %v991_v14 }
 0x19f   : > { %1376 = vst [vmem:[%s1863_s27 + $0xb58] sm:$0xff] %v992_v0 }
 0x1a0   : > { %1377 = vst [vmem:[%s1863_s27 + $0xb60] sm:$0xff] %v993_v28 }
 0x1a1   : > { %1378 = vst [vmem:[%s1863_s27 + $0xb68] sm:$0xff] %v994_v2 }
 0x1a2   : > { %1379 = vst [vmem:[%s1863_s27 + $0xb70] sm:$0xff] %v995_v25 }
 0x1a3   : > { %1380 = vst [vmem:[%s1863_s27 + $0xb78] sm:$0xff] %v996_v3 }
 0x1a4   : > { %1381 = vst [vmem:[%s1863_s27 + $0xb80] sm:$0xff] %v997_v4 }
 0x1a5   : > { %1382 = vst [vmem:[%s1863_s27 + $0xb88] sm:$0xff] %v998_v31 }
 0x1a6   : > { %1383 = vst [vmem:[%s1863_s27 + $0xb90] sm:$0xff] %v999_v34 }
 0x1a7   : > { %1384 = vst [vmem:[%s1863_s27 + $0xb98] sm:$0xff] %v1000_v9 }
 0x1a8   : > { %1385 = vst [vmem:[%s1863_s27 + $0xba0] sm:$0xff] %v1001_v35 }
 0x1a9   : > { %1386 = vst [vmem:[%s1863_s27 + $0xba8] sm:$0xff] %v1002_v37 }
 0x1aa   : > { %1387 = vst [vmem:[%s1863_s27 + $0xbb0] sm:$0xff] %v1003_v20 }
 0x1ab   : > { %1388 = vst [vmem:[%s1863_s27 + $0xbb8] sm:$0xff] %v1004_v24 }
 0x1ac   : > { %1389 = vst [vmem:[%s1863_s27 + $0xbc0] sm:$0xff] %v1005_v40 }
 0x1ad   : > { %1390 = vst [vmem:[%s1863_s27 + $0xbc8] sm:$0xff] %v1006_v47 }
 0x1ae   : > { %1391 = vst [vmem:[%s1863_s27 + $0xbd0] sm:$0xff] %v1007_v50 }
 0x1af   : > { %1392 = vst [vmem:[%s1863_s27 + $0xbd8] sm:$0xff] %v1008_v46 }
 0x1b0   : > { %1393 = vst [vmem:[%s1863_s27 + $0xbe0] sm:$0xff] %v1009_v55 }
 0x1b1   : > { %1394 = vst [vmem:[%s1863_s27 + $0xbe8] sm:$0xff] %v1010_v7 }
 0x1b2   : > { %1395 = vst [vmem:[%s1863_s27 + $0xbf0] sm:$0xff] %v1011_v23 }
 0x1b3   : > { %1396 = vst [vmem:[%s1863_s27 + $0xbf8] sm:$0xff] %v1012_v60 }
 0x1b4   : > { %1654 = shalt.err (!%p1651_p13)
}
 0x1b5   : > { %s1716_s21 = smov 128   ;;  %s1717_s5 = smov 8  }
 0x1b6   : > { %1520 = dma.vmem_to_hbm [thread:$0]  (%p1792_p9), %s1414_s11, 49152, %s1416_s12, %s1398_s13, %s1716_s21, %s1716_s21, %s1717_s5  }
 0x1b7 PF: > { %s1430_s6 = sand.u32 1, %s1691_s16   ;;  %p1527_p0 = pnand %p1508_p12, %p1799_p11 }
 0x1b8   : > { %s1431_s7 = scalar_lea.sflag [#allocation6], %s1430_s6 }
 0x1b9   : > { %p1528_p1 = pneg %p1527_p0 }
 0x1bb   : > { %1686 = dma.done.wait (%p1528_p1), %s1431_s7, 49152  }
 0x1bc   : > { %1688 = vsyncadd (%p1528_p1), %s1431_s7, 4294918144  ;;  %s27_s0 = sadd.s32 1, %s1711_s0   ;;  %s3176_s16 = smov %s1695_s17 }
 0x1bd   : > { %p24_p2 = scmp.ge.s32.totalorder %s27_s0, 4   ;;  %s3177_s17 = smov %s1699_s18 }
 0x1be   : > { %s3178_s18 = smov %s1797_s29  ;;  %s3179_s19 = smov %s1707_s20 }
 0x1bf   : > { %s3180_s20 = smov %s3182_s23  ;;  %26 = sbr.rel (!%p24_p2) target bundleno = 12 (0xc), region = 74 }
 0x1c4   :  { %1437 = vsyncpa [#allocation5], 1 }
 0x1c5   :  { %1439 = vsyncpa [#allocation5 + $0x1], 1 }
 0x1c6   :  { %1440 = vsyncpa [#allocation6], 1 }
 0x1c7   :  { %1442 = vsyncpa [#allocation6 + $0x1], 1 }

</bundles_post_ra>
